<compile_context>
chip_gen: v7x
topology: tpu7x:2x2x1
jax: 0.10.0
libtpu: 0.0.40
codegen_flags: <defaults>
</compile_context>

<pallas_src>
import functools

import jax
import jax.numpy as jnp
from jax.experimental import pallas as pl
from jax.experimental.pallas import tpu as pltpu

_LOG2E = 1.4426950408889634


def _vmem_budget_bytes():
    """Generation-aware scoped-VMEM budget with headroom.

    v5e/v6e: 128 MiB physical -> ~96 MiB budget.
    v7x:      64 MiB physical -> ~48 MiB budget.
    """
    cap = 128 * 1024 * 1024
    try:
        cap = int(pltpu.get_tpu_info().vmem_capacity_bytes)
    except Exception:
        pass
    return min((cap * 3) // 4, 96 * 1024 * 1024)


def _ln_qkv_kernel(x_ref, gamma_ref, beta_ref, wqkv_ref,
                   q_ref, k_ref, v_ref, *, inner, q_scale, eps):
    # x_ref:      (1, Tn, D)      one (batch, seq-tile) block (any float dtype)
    # gamma/beta: (1, D)          LayerNorm affine params (f32)
    # wqkv_ref:   (D, 3*inner)    to_qkv weight (bf16, pre-transposed)
    # q/k/v_ref:  (1, Tn, inner)  bf16 outputs, lane-dense minor dim
    x = x_ref[0].astype(jnp.float32)                          # (Tn, D)

    # ---- LayerNorm over last dim (f32 stats) ----
    mean = jnp.mean(x, axis=-1, keepdims=True)
    var = jnp.mean(jnp.square(x - mean), axis=-1, keepdims=True)
    xn = (x - mean) * jax.lax.rsqrt(var + eps)
    xn = (xn * gamma_ref[...] + beta_ref[...]).astype(jnp.bfloat16)

    # ---- QKV projection (no bias), bf16 MXU matmul, f32 accumulate ----
    qkv = jnp.dot(xn, wqkv_ref[...],
                  preferred_element_type=jnp.float32)         # (Tn, 3*inner)

    # Fold softmax_scale * log2(e) into q (cheaper than scaling (Tq,Tk)
    # score tiles every kv step, and enables exp2 in kernel 2).
    q_ref[0] = (qkv[:, 0 * inner:1 * inner] * q_scale).astype(jnp.bfloat16)
    k_ref[0] = qkv[:, 1 * inner:2 * inner].astype(jnp.bfloat16)
    v_ref[0] = qkv[:, 2 * inner:3 * inner].astype(jnp.bfloat16)


def _flash_attn_out_kernel(q_ref, k_ref, v_ref, wo_ref, bo_ref, o_ref,
                           m_ref, l_ref, acc_ref, *, heads, dim_head):
    # q_ref: (1, Tq, inner) bf16, pre-scaled by softmax_scale*log2(e)
    # k/v_ref: (1, Tk, inner) bf16
    # wo_ref: (inner, D) bf16    bo_ref: (1, D) f32    o_ref: (1, Tq, D)
    # scratch: m_ref/l_ref (Tq, heads) f32 (heads lane-packed),
    #          acc_ref (Tq, inner) f32
    ki = pl.program_id(2)

    @pl.when(ki == 0)
    def _init():
        m_ref[...] = jnp.full_like(m_ref, -jnp.inf)
        l_ref[...] = jnp.zeros_like(l_ref)
        acc_ref[...] = jnp.zeros_like(acc_ref)

    q = q_ref[0]                                              # (Tq, inner) bf16
    k = k_ref[0]                                              # (Tk, inner) bf16
    v = v_ref[0]                                              # (Tk, inner) bf16

    # Static loop over heads using lane slices of the bf16 slabs.  Running
    # stats and the accumulator are updated in place on VMEM scratch (the
    # lane-dense-output rule only applies to the HBM out_spec), avoiding the
    # per-kv-step alpha broadcast_to + concatenate slabs.
    # NOTE: dim_head < 128 under-fills the MXU contraction for QK^T; this is
    # inherent to the module's dim_head choice.
    for h in range(heads):
        lo = h * dim_head
        hi = lo + dim_head
        q_h = q[:, lo:hi]                                     # (Tq, dh) bf16
        k_h = k[:, lo:hi]                                     # (Tk, dh) bf16
        v_h = v[:, lo:hi]                                     # (Tk, dh) bf16

        # scores in log2 domain (scale * log2e already folded into q)
        s = jax.lax.dot_general(
            q_h, k_h, (((1,), (1,)), ((), ())),
            preferred_element_type=jnp.float32)               # (Tq, Tk) f32

        m_prev = m_ref[:, h:h + 1]                            # (Tq, 1)
        l_prev = l_ref[:, h:h + 1]
        m_new = jnp.maximum(m_prev, jnp.max(s, axis=-1, keepdims=True))
        alpha = jnp.exp2(m_prev - m_new)                      # (Tq, 1)
        # TODO(synk): on v6e/v7x the exp2 below could run on bf16 operands for
        # ~2x EUP throughput; kept f32 so one kernel is correct/optimal on v5e.
        p = jnp.exp2(s - m_new)                               # (Tq, Tk) f32
        l_ref[:, h:h + 1] = alpha * l_prev + jnp.sum(p, axis=-1, keepdims=True)
        m_ref[:, h:h + 1] = m_new

        pv = jnp.dot(p.astype(jnp.bfloat16), v_h,
                     preferred_element_type=jnp.float32)      # (Tq, dh) f32
        acc_ref[:, lo:hi] = alpha * acc_ref[:, lo:hi] + pv

    @pl.when(ki == pl.num_programs(2) - 1)
    def _finalize():
        inv_l = pl.reciprocal(l_ref[...], approx=True)        # (Tq, heads), EUP
        out_parts = []
        for h in range(heads):
            lo = h * dim_head
            hi = lo + dim_head
            out_parts.append(
                (acc_ref[:, lo:hi] * inv_l[:, h:h + 1]).astype(jnp.bfloat16))
        out = jnp.concatenate(out_parts, axis=-1)             # (Tq, inner) bf16
        # ---- output projection ----
        y = jnp.dot(out, wo_ref[...],
                    preferred_element_type=jnp.float32) + bo_ref[...]
        o_ref[0] = y.astype(o_ref.dtype)


def attention_pallas(x, gamma, beta, w_qkv_t, w_out_t, b_out,
                     *, heads, dim_head, eps=1e-5,
                     block_n=None, block_q=None, block_kv=None,
                     out_dtype=jnp.float32):
    """x: (B, N, D), ideally bf16 (kernel 1 is HBM-bound).  Weights ideally
    pre-cast to bf16 upstream.  Returns (B, N, D) in out_dtype."""
    B, N, D = x.shape
    inner = heads * dim_head
    q_scale = (dim_head ** -0.5) * _LOG2E      # fold log2(e) -> exp2 in kernel 2

    vmem_limit = _vmem_budget_bytes()
    big_vmem = vmem_limit >= 80 * 1024 * 1024  # v5e/v6e (128 MiB phys)

    # Generation-aware default tiles: bigger on v5e/v6e, conservative on v7x
    # (64 MiB VMEM, 2 TensorCores need >=2 parallel grid units).
    if block_n is None:
        block_n = 1024 if big_vmem else 512
    if block_q is None:
        block_q = 256
    if block_kv is None:
        block_kv = 512 if big_vmem else 256

    block_n = min(block_n, N)
    block_q = min(block_q, N)
    block_kv = min(block_kv, N)
    assert N % block_n == 0 and N % block_q == 0 and N % block_kv == 0, \
        "sequence length must be divisible by the tile sizes"
    # TODO(synk): ragged ViT lengths (e.g. N=197) need padded / masked partial
    # tiles; not implemented here.

    # bf16 weights: halves DMA bytes / VMEM footprint, 2x MXU throughput.
    # Pre-cast upstream so these are no-ops per call (hoisted weight casts).
    wqkv_bf = w_qkv_t if w_qkv_t.dtype == jnp.bfloat16 else w_qkv_t.astype(jnp.bfloat16)
    wout_bf = w_out_t if w_out_t.dtype == jnp.bfloat16 else w_out_t.astype(jnp.bfloat16)
    gamma2 = gamma.reshape(1, D).astype(jnp.float32)
    beta2 = beta.reshape(1, D).astype(jnp.float32)
    bout2 = b_out.reshape(1, D).astype(jnp.float32)

    x_bytes = jnp.dtype(x.dtype).itemsize
    o_bytes = jnp.dtype(out_dtype).itemsize

    # ---------------- kernel 1: LayerNorm + QKV projection ----------------
    cost_proj = pl.CostEstimate(
        flops=2 * B * N * D * 3 * inner,
        transcendentals=B * N,
        bytes_accessed=(x_bytes * B * N * D + 2 * D * 3 * inner
                        + 2 * 3 * B * N * inner + 8 * D),
    )
    q, k, v = pl.pallas_call(
        functools.partial(_ln_qkv_kernel, inner=inner, q_scale=q_scale, eps=eps),
        out_shape=tuple(jax.ShapeDtypeStruct((B, N, inner), jnp.bfloat16)
                        for _ in range(3)),
        grid_spec=pltpu.PrefetchScalarGridSpec(
            num_scalar_prefetch=0,
            grid=(B, N // block_n),
            in_specs=[
                pl.BlockSpec((1, block_n, D), lambda b, i: (b, i, 0)),      # x
                pl.BlockSpec((1, D), lambda b, i: (0, 0)),                  # gamma
                pl.BlockSpec((1, D), lambda b, i: (0, 0)),                  # beta
                pl.BlockSpec((D, 3 * inner), lambda b, i: (0, 0)),          # Wqkv^T
            ],
            out_specs=[
                pl.BlockSpec((1, block_n, inner), lambda b, i: (b, i, 0)),
                pl.BlockSpec((1, block_n, inner), lambda b, i: (b, i, 0)),
                pl.BlockSpec((1, block_n, inner), lambda b, i: (b, i, 0)),
            ],
        ),
        compiler_params=pltpu.CompilerParams(
            dimension_semantics=("parallel", "parallel"),
            vmem_limit_bytes=vmem_limit),
        cost_estimate=cost_proj,
    )(x, gamma2, beta2, wqkv_bf)

    # ------------ kernel 2: flash attention + output projection ------------
    kv_passes = N // block_q   # K/V are re-streamed once per q tile
    cost_attn = pl.CostEstimate(
        flops=4 * B * heads * N * N * dim_head + 2 * B * N * inner * D,
        transcendentals=B * heads * N * N,
        bytes_accessed=(2 * B * N * inner                     # q
                        + 2 * 2 * B * N * inner * kv_passes   # k, v re-reads
                        + 2 * inner * D + 4 * D
                        + o_bytes * B * N * D),
    )
    out = pl.pallas_call(
        functools.partial(_flash_attn_out_kernel, heads=heads,
                          dim_head=dim_head),
        out_shape=jax.ShapeDtypeStruct((B, N, D), out_dtype),
        grid_spec=pltpu.PrefetchScalarGridSpec(
            num_scalar_prefetch=0,
            grid=(B, N // block_q, N // block_kv),
            in_specs=[
                pl.BlockSpec((1, block_q, inner), lambda b, qi, ki: (b, qi, 0)),
                pl.BlockSpec((1, block_kv, inner), lambda b, qi, ki: (b, ki, 0)),
                pl.BlockSpec((1, block_kv, inner), lambda b, qi, ki: (b, ki, 0)),
                pl.BlockSpec((inner, D), lambda b, qi, ki: (0, 0)),         # Wout^T
                pl.BlockSpec((1, D), lambda b, qi, ki: (0, 0)),             # b_out
            ],
            out_specs=pl.BlockSpec((1, block_q, D), lambda b, qi, ki: (b, qi, 0)),
            scratch_shapes=[
                pltpu.VMEM((block_q, heads), jnp.float32),   # m (heads lane-packed)
                pltpu.VMEM((block_q, heads), jnp.float32),   # l (heads lane-packed)
                pltpu.VMEM((block_q, inner), jnp.float32),   # acc slab
            ],
        ),
        compiler_params=pltpu.CompilerParams(
            dimension_semantics=("parallel", "parallel", "arbitrary"),
            vmem_limit_bytes=vmem_limit),
        cost_estimate=cost_attn,
    )(q, k, v, wout_bf, bout2)
    return out


def attention_ref(x, gamma, beta, w_qkv_t, w_out_t, b_out,
                  *, heads, dim_head, eps=1e-5):
    """Pure-JAX f32 reference mirroring the PyTorch forward."""
    B, N, D = x.shape
    inner = heads * dim_head
    scale = dim_head ** -0.5
    mean = jnp.mean(x, axis=-1, keepdims=True)
    var = jnp.mean((x - mean) ** 2, axis=-1, keepdims=True)
    xn = (x - mean) / jnp.sqrt(var + eps) * gamma + beta
    qkv = xn @ w_qkv_t
    q, k, v = jnp.split(qkv, 3, axis=-1)

    def to_heads(t):
        return t.reshape(B, N, heads, dim_head).transpose(0, 2, 1, 3)

    q, k, v = map(to_heads, (q, k, v))
    dots = jnp.einsum('bhnd,bhmd->bhnm', q, k) * scale
    attn = jax.nn.softmax(dots, axis=-1)
    out = jnp.einsum('bhnm,bhmd->bhnd', attn, v)
    out = out.transpose(0, 2, 1, 3).reshape(B, N, inner)
    return out @ w_out_t + b_out


if __name__ == "__main__":
    # Small but lane-dense shapes: D and inner multiples of 128, N a multiple
    # of the seq tiles.  With N=256, kernel 2 runs (B, 1, 1) grid points:
    # B*1 = 2 parallel units, enough for both v7x TensorCores.
    B, N, D = 2, 256, 128
    heads, dim_head = 4, 32
    inner = heads * dim_head

    key = jax.random.PRNGKey(0)
    kx, kq, ko, kb, kg, kbt = jax.random.split(key, 6)

    x = jax.random.normal(kx, (B, N, D), dtype=jnp.float32)
    gamma = 1.0 + 0.1 * jax.random.normal(kg, (D,), jnp.float32)
    beta = 0.05 * jax.random.normal(kbt, (D,), jnp.float32)
    w_qkv_t = jax.random.normal(kq, (D, 3 * inner), jnp.float32) * 0.05
    w_out_t = jax.random.normal(ko, (inner, D), jnp.float32) * 0.05
    b_out = jax.random.normal(kb, (D,), jnp.float32) * 0.01

    # Activations in bf16 and weights pre-cast to bf16 once (hoisted out of
    # the forward path): kernel 1 is HBM-bound, this halves its x stream.
    x_bf = x.astype(jnp.bfloat16)
    wqkv_bf = w_qkv_t.astype(jnp.bfloat16)
    wout_bf = w_out_t.astype(jnp.bfloat16)

    y = attention_pallas(x_bf, gamma, beta, wqkv_bf, wout_bf, b_out,
                         heads=heads, dim_head=dim_head,
                         out_dtype=jnp.float32)
    y = jax.block_until_ready(y)

    # Reference on the same (bf16-quantized) activations, all f32 math, so the
    # comparison isolates in-kernel precision (bf16 matmuls, approx recip).
    y_ref = attention_ref(x_bf.astype(jnp.float32), gamma, beta,
                          w_qkv_t, w_out_t, b_out,
                          heads=heads, dim_head=dim_head)
    err = float(jnp.max(jnp.abs(y - y_ref)))
    assert y.shape == (B, N, D)
    assert jnp.allclose(y, y_ref, atol=3e-2, rtol=3e-2), f"max err {err}"

    print("KERNEL_OK")
</pallas_src>

<mosaic_0001>
module attributes {stable_mosaic.version = 11 : i64} {
  func.func @_ln_qkv_kernel(%arg0: i32, %arg1: i32, %arg2: memref<1x256x128xbf16, #tpu.memory_space<vmem>>, %arg3: memref<1x128xf32, #tpu.memory_space<vmem>>, %arg4: memref<1x128xf32, #tpu.memory_space<vmem>>, %arg5: memref<128x384xbf16, #tpu.memory_space<vmem>>, %arg6: memref<1x256x128xbf16, #tpu.memory_space<vmem>>, %arg7: memref<1x256x128xbf16, #tpu.memory_space<vmem>>, %arg8: memref<1x256x128xbf16, #tpu.memory_space<vmem>>) attributes {dimension_semantics = [#tpu.dimension_semantics<parallel>, #tpu.dimension_semantics<parallel>], iteration_bounds = array<i64: 2, 1>, scalar_prefetch = 0 : i64, scratch_operands = 0 : i64, tpu.core_type = #tpu.core_type<tc>, window_params = [{transform_indices = @transform_0, window_bounds = array<i64: 1, 256, 128>}, {pipeline_mode = #tpu.pipeline_mode<synchronous>, transform_indices = @transform_1, window_bounds = array<i64: 1, 128>}, {pipeline_mode = #tpu.pipeline_mode<synchronous>, transform_indices = @transform_2, window_bounds = array<i64: 1, 128>}, {pipeline_mode = #tpu.pipeline_mode<synchronous>, transform_indices = @transform_3, window_bounds = array<i64: 128, 384>}, {transform_indices = @transform_4, window_bounds = array<i64: 1, 256, 128>}, {transform_indices = @transform_5, window_bounds = array<i64: 1, 256, 128>}, {transform_indices = @transform_6, window_bounds = array<i64: 1, 256, 128>}]} {
    %c0 = arith.constant 0 : index
    %c0_0 = arith.constant 0 : index
    %c0_1 = arith.constant 0 : index
    %0 = vector.load %arg2[%c0, %c0_0, %c0_1] : memref<1x256x128xbf16, #tpu.memory_space<vmem>>, vector<1x256x128xbf16>
    %1 = vector.shape_cast %0 : vector<1x256x128xbf16> to vector<256x128xbf16>
    %2 = arith.extf %1 : vector<256x128xbf16> to vector<256x128xf32>
    %cst = arith.constant dense<0.000000e+00> : vector<256xf32>
    %3 = vector.multi_reduction <add>, %2, %cst [1] : vector<256x128xf32> to vector<256xf32>
    %4 = vector.shape_cast %3 : vector<256xf32> to vector<256x1xf32>
    %cst_2 = arith.constant 1.280000e+02 : f32
    %5 = vector.broadcast %cst_2 : f32 to vector<256x1xf32>
    %6 = arith.divf %4, %5 : vector<256x1xf32>
    %7 = vector.broadcast %6 : vector<256x1xf32> to vector<256x128xf32>
    %8 = arith.subf %2, %7 : vector<256x128xf32>
    %9 = arith.mulf %8, %8 : vector<256x128xf32>
    %cst_3 = arith.constant dense<0.000000e+00> : vector<256xf32>
    %10 = vector.multi_reduction <add>, %9, %cst_3 [1] : vector<256x128xf32> to vector<256xf32>
    %11 = vector.shape_cast %10 : vector<256xf32> to vector<256x1xf32>
    %cst_4 = arith.constant 1.280000e+02 : f32
    %12 = vector.broadcast %cst_4 : f32 to vector<256x1xf32>
    %13 = arith.divf %11, %12 : vector<256x1xf32>
    %14 = vector.broadcast %6 : vector<256x1xf32> to vector<256x128xf32>
    %15 = arith.subf %2, %14 : vector<256x128xf32>
    %cst_5 = arith.constant 9.99999974E-6 : f32
    %16 = vector.broadcast %cst_5 : f32 to vector<256x1xf32>
    %17 = arith.addf %13, %16 : vector<256x1xf32>
    %18 = math.rsqrt %17 : vector<256x1xf32>
    %19 = vector.broadcast %18 : vector<256x1xf32> to vector<256x128xf32>
    %20 = arith.mulf %15, %19 : vector<256x128xf32>
    %c0_6 = arith.constant 0 : index
    %c0_7 = arith.constant 0 : index
    %21 = vector.load %arg3[%c0_6, %c0_7] : memref<1x128xf32, #tpu.memory_space<vmem>>, vector<1x128xf32>
    %22 = vector.broadcast %21 : vector<1x128xf32> to vector<256x128xf32>
    %23 = arith.mulf %20, %22 : vector<256x128xf32>
    %c0_8 = arith.constant 0 : index
    %c0_9 = arith.constant 0 : index
    %24 = vector.load %arg4[%c0_8, %c0_9] : memref<1x128xf32, #tpu.memory_space<vmem>>, vector<1x128xf32>
    %25 = vector.broadcast %24 : vector<1x128xf32> to vector<256x128xf32>
    %26 = arith.addf %23, %25 : vector<256x128xf32>
    %27 = arith.truncf %26 : vector<256x128xf32> to vector<256x128xbf16>
    %c0_10 = arith.constant 0 : index
    %c0_11 = arith.constant 0 : index
    %28 = vector.load %arg5[%c0_10, %c0_11] : memref<128x384xbf16, #tpu.memory_space<vmem>>, vector<128x384xbf16>
    %cst_12 = arith.constant dense<0.000000e+00> : vector<256x384xf32>
    %29 = tpu.matmul %27, %28, %cst_12 {dimension_numbers = #tpu.dot_dimension_numbers<[1], [0], [0], [1], [0, 0, 1, 1], [], []>} : vector<256x128xbf16>, vector<128x384xbf16>, vector<256x384xf32> -> vector<256x384xf32>
    %30 = vector.extract_strided_slice %29 {offsets = [0, 0], sizes = [256, 128], strides = [1, 1]} : vector<256x384xf32> to vector<256x128xf32>
    %cst_13 = arith.constant 0.255034864 : f32
    %31 = vector.broadcast %cst_13 : f32 to vector<256x128xf32>
    %32 = arith.mulf %30, %31 : vector<256x128xf32>
    %33 = arith.truncf %32 : vector<256x128xf32> to vector<256x128xbf16>
    %c0_14 = arith.constant 0 : index
    %c0_15 = arith.constant 0 : index
    %c0_16 = arith.constant 0 : index
    %34 = vector.load %arg6[%c0_14, %c0_15, %c0_16] : memref<1x256x128xbf16, #tpu.memory_space<vmem>>, vector<1x256x128xbf16>
    %35 = vector.shape_cast %34 : vector<1x256x128xbf16> to vector<256x128xbf16>
    %36 = vector.shape_cast %33 : vector<256x128xbf16> to vector<1x256x128xbf16>
    tpu.vector_store %arg6[%c0_14, %c0_15, %c0_16], %36 {strides = array<i32>} : memref<1x256x128xbf16, #tpu.memory_space<vmem>>, vector<1x256x128xbf16>,
    %37 = vector.extract_strided_slice %29 {offsets = [0, 128], sizes = [256, 128], strides = [1, 1]} : vector<256x384xf32> to vector<256x128xf32>
    %38 = arith.truncf %37 : vector<256x128xf32> to vector<256x128xbf16>
    %c0_17 = arith.constant 0 : index
    %c0_18 = arith.constant 0 : index
    %c0_19 = arith.constant 0 : index
    %39 = vector.load %arg7[%c0_17, %c0_18, %c0_19] : memref<1x256x128xbf16, #tpu.memory_space<vmem>>, vector<1x256x128xbf16>
    %40 = vector.shape_cast %39 : vector<1x256x128xbf16> to vector<256x128xbf16>
    %41 = vector.shape_cast %38 : vector<256x128xbf16> to vector<1x256x128xbf16>
    tpu.vector_store %arg7[%c0_17, %c0_18, %c0_19], %41 {strides = array<i32>} : memref<1x256x128xbf16, #tpu.memory_space<vmem>>, vector<1x256x128xbf16>,
    %42 = vector.extract_strided_slice %29 {offsets = [0, 256], sizes = [256, 128], strides = [1, 1]} : vector<256x384xf32> to vector<256x128xf32>
    %43 = arith.truncf %42 : vector<256x128xf32> to vector<256x128xbf16>
    %c0_20 = arith.constant 0 : index
    %c0_21 = arith.constant 0 : index
    %c0_22 = arith.constant 0 : index
    %44 = vector.load %arg8[%c0_20, %c0_21, %c0_22] : memref<1x256x128xbf16, #tpu.memory_space<vmem>>, vector<1x256x128xbf16>
    %45 = vector.shape_cast %44 : vector<1x256x128xbf16> to vector<256x128xbf16>
    %46 = vector.shape_cast %43 : vector<256x128xbf16> to vector<1x256x128xbf16>
    tpu.vector_store %arg8[%c0_20, %c0_21, %c0_22], %46 {strides = array<i32>} : memref<1x256x128xbf16, #tpu.memory_space<vmem>>, vector<1x256x128xbf16>,
    return
  }
  func.func @transform_0(%arg0: i32, %arg1: i32) -> (i32, i32, i32) {
    %c0_i32 = arith.constant 0 : i32
    %c0_i32_0 = arith.constant 0 : i32
    return %arg0, %arg1, %c0_i32 : i32, i32, i32
  }
  func.func @transform_1(%arg0: i32, %arg1: i32) -> (i32, i32) {
    %c0_i32 = arith.constant 0 : i32
    %c0_i32_0 = arith.constant 0 : i32
    %c0_i32_1 = arith.constant 0 : i32
    return %c0_i32, %c0_i32_0 : i32, i32
  }
  func.func @transform_2(%arg0: i32, %arg1: i32) -> (i32, i32) {
    %c0_i32 = arith.constant 0 : i32
    %c0_i32_0 = arith.constant 0 : i32
    %c0_i32_1 = arith.constant 0 : i32
    return %c0_i32, %c0_i32_0 : i32, i32
  }
  func.func @transform_3(%arg0: i32, %arg1: i32) -> (i32, i32) {
    %c0_i32 = arith.constant 0 : i32
    %c0_i32_0 = arith.constant 0 : i32
    %c0_i32_1 = arith.constant 0 : i32
    return %c0_i32, %c0_i32_0 : i32, i32
  }
  func.func @transform_4(%arg0: i32, %arg1: i32) -> (i32, i32, i32) {
    %c0_i32 = arith.constant 0 : i32
    %c0_i32_0 = arith.constant 0 : i32
    return %arg0, %arg1, %c0_i32 : i32, i32, i32
  }
  func.func @transform_5(%arg0: i32, %arg1: i32) -> (i32, i32, i32) {
    %c0_i32 = arith.constant 0 : i32
    %c0_i32_0 = arith.constant 0 : i32
    return %arg0, %arg1, %c0_i32 : i32, i32, i32
  }
  func.func @transform_6(%arg0: i32, %arg1: i32) -> (i32, i32, i32) {
    %c0_i32 = arith.constant 0 : i32
    %c0_i32_0 = arith.constant 0 : i32
    return %arg0, %arg1, %c0_i32 : i32, i32, i32
  }
}

</mosaic_0001>

<bundles_post_ra>
// kernel: tpu_custom_call.1
= control target key start
LH: loop header
LB: loop body
LE: loop exit
PB: predicated region body
PF: predicated region fallthrough
CT: control target
= control target key end

     0   :  { %s4273_s0 = inlined_call_operand.hbm [shape: bf16[2,256,128], index: 0, kind: input, shape index: {}]   ;;  %s4274_s1 = inlined_call_operand.hbm [shape: f32[1,128], index: 1, kind: input, shape index: {}]   ;;  %s4275_s2 = inlined_call_operand.hbm [shape: f32[1,128], index: 2, kind: input, shape index: {}]   ;;  %s4276_s3 = inlined_call_operand.hbm [shape: bf16[128,384], index: 3, kind: input, shape index: {}]   ;;  %s4277_s4 = inlined_call_operand.hbm [shape: bf16[2,256,128], index: 4, kind: output, shape index: {0}]   ;;  %s4278_s5 = inlined_call_operand.hbm [shape: bf16[2,256,128], index: 5, kind: output, shape index: {1}]   ;;  %s4279_s6 = inlined_call_operand.hbm [shape: bf16[2,256,128], index: 6, kind: output, shape index: {2}]  }
   0x1   :  { %4284 = sst [smem:[#allocation19_spill]] %s4273_s0 }
   0x2   :  { %4285 = sst [smem:[#allocation20_spill]] %s4274_s1 }
   0x3   :  { %4286 = sst [smem:[#allocation21_spill]] %s4275_s2 }
   0x4   :  { %12 = vsyncpa [#allocation3], 0 }
   0x5   :  { %14 = vsyncpa [#allocation3 + $0x1], 0 }
   0x6   :  { %15 = vsyncpa [#allocation6], 0 }
   0x7   :  { %16 = vsyncpa [#allocation9], 0 }
   0x8   :  { %17 = vsyncpa [#allocation4], 0 }
   0x9   :  { %19 = vsyncpa [#allocation4 + $0x1], 0 }
   0xa   :  { %20 = vsyncpa [#allocation12], 0 }
   0xb   :  { %22 = vsyncpa [#allocation12 + $0x1], 0  ;;  %s3361_s21 = smov 0   ;;  %s3363_s22 = smov 0  }
   0xc   :  { %s3365_s23 = smov 0   ;;  %s3367_s24 = smov 0  }
   0xd   :  { %s3369_s25 = smov 0   ;;  %s3371_s26 = smov 0  }
   0xe LB: > { %s3392_s27 = sadd.s32 4294967295, %s3310_s26   ;;  %s4283_s28 = sadd.s32 4294967294, %s3310_s26   ;;  %s3310_s26 = sphi %s3371_s26, %s28_s26   ;;  %s3306_s25 = sphi %s3369_s25, %s4312_s25   ;;  %s3302_s24 = sphi %s3367_s24, %s4311_s24   ;;  %s3298_s23 = sphi %s3365_s23, %s4310_s23   ;;  %s3294_s22 = sphi %s3363_s22, %s4309_s22   ;;  %s3290_s21 = sphi %s3361_s21, %s4308_s21  }
   0xf   : > { %p62_p0 = scmp.ne.s32.totalorder %s3294_s22, %s3290_s21  ;;  %p4280_p1 = scmp.eq.s32.totalorder %s3392_s27, 0 }
  0x10   : > { %p157_p3 = scmp.eq.s32.totalorder %s4283_s28, 1  ;;  %p2139_p5 = scmp.ge.s32.totalorder %s3310_s26, 1 }
  0x11   : > { %p3403_p4 = por %p4280_p1, %p62_p0  ;;  %p220_p7 = scmp.lt.s32.totalorder %s3310_s26, 3 }
  0x12   : > { %p3408_p6 = por %p157_p3, %p62_p0  ;;  %s3312_s8 = smov [#allocation5]  }
  0x13   : > { %s4287_s29 = scalar_select %p3403_p4, 1, 0 }
  0x14   : > { %s4288_s30 = scalar_select %p3408_p6, 1, 0 }
  0x15   : > { %p3413_p8 = pnand %p2139_p5, %p220_p7  ;;  %s233_s9 = sshll.u32 %s3312_s8, 4  ;;  %s234_s9 = int_to_ptr.vmem [resolvable:$true] %s233_s9 }
  0x16   : > { %s3313_s10 = smov [#allocation7]   ;;  %s3314_s13 = smov [#allocation8]  }
  0x17   : > { %s4289_s7 = scalar_select %p3413_p8, 1, 0 }
  0x18   : > { %p2860_p10 = pneg %p3413_p8  ;;  %s244_s11 = sshll.u32 %s3313_s10, 4  ;;  %s3426_s11 = int_to_ptr.vmem [resolvable:$true] %s244_s11 }
  0x19   : > { %s254_s14 = sshll.u32 %s3314_s13, 4  ;;  %s4291_s1 = sld [smem:[#allocation20_spill]]  ;;  %s3428_s14 = int_to_ptr.vmem [resolvable:$true] %s254_s14 }
  0x1a   : > { %p3422_p11 = pnand %p2860_p10, %p4280_p1 }
  0x1c   : > { %p3438_p13 = pneg %p3422_p11 }
  0x1f   : > { %s3046_s17 = scalar_lea.hbm %s4291_s1, 16 }
  0x20   : > { %p3047_p12 = scmp.ne.s32.totalorder %s4291_s1, %s3046_s17  ;;  %p3053_p5 = scmp.lt.u32.totalorder %s3046_s17, %s4291_s1 }
  0x22   : > { %p3049_p0 = pnand %p3438_p13, %p3047_p12 }
  0x24   : > { %p3050_p3 = pneg %p3049_p0 }
  0x26   : > { %p3055_p7 = pnand %p3053_p5, %p3050_p3 }
  0x28   : > { %3058 = shalt.err (!%p3055_p7)
}
  0x29   : > { %s3059_s13 = scalar_lea.vmem %s234_s9, 16  ;;  %s3066_s15 = scalar_lea.vmem %s234_s9, 32 }
  0x2a   : > { %p3060_p10 = scmp.ne.s32.totalorder %s234_s9, %s3059_s13  ;;  %p3067_p2 = scmp.lt.s32.totalorder %s234_s9, %s234_s9 }
  0x2b   : > { %p3068_p6 = scmp.lt.s32.totalorder %s3066_s15, %s3059_s13 }
  0x2c   : > { %p3062_p9 = pnand %p3060_p10, %p3438_p13 }
  0x2d   : > { %p3069_p4 = por %p3068_p6, %p3067_p2 }
  0x2e   : > { %p3063_p1 = pneg %p3062_p9 }
  0x30   : > { %p3070_p8 = pnand %p3069_p4, %p3063_p1 }
  0x32   : > { %3073 = shalt.err (!%p3070_p8)
}
  0x33   : > { %2863 = dma.hbm_to_vmem [thread:$0]  (!%p3422_p11), %s4291_s1, 16, %s234_s9, [#allocation6]  }
  0x34   : > { %s4293_s2 = sld [smem:[#allocation21_spill]] }
  0x3a   : > { %s3074_s8 = scalar_lea.hbm %s4293_s2, 16 }
  0x3b   : > { %p3075_p9 = scmp.ne.s32.totalorder %s4293_s2, %s3074_s8  ;;  %p3081_p1 = scmp.lt.u32.totalorder %s3074_s8, %s4293_s2 }
  0x3d   : > { %p3077_p12 = pnand %p3075_p9, %p3438_p13 }
  0x3f   : > { %p3078_p2 = pneg %p3077_p12 }
  0x41   : > { %p3083_p4 = pnand %p3081_p1, %p3078_p2 }
  0x43   : > { %3086 = shalt.err (!%p3083_p4)
}
  0x44   : > { %s3087_s9 = scalar_lea.vmem %s3426_s11, 16  ;;  %s3094_s28 = scalar_lea.vmem %s3426_s11, 32 }
  0x45   : > { %p3088_p6 = scmp.ne.s32.totalorder %s3426_s11, %s3087_s9  ;;  %p3095_p3 = scmp.lt.s32.totalorder %s3426_s11, %s3426_s11 }
  0x46   : > { %p3096_p5 = scmp.lt.s32.totalorder %s3094_s28, %s3087_s9 }
  0x47   : > { %p3090_p8 = pnand %p3088_p6, %p3438_p13 }
  0x48   : > { %p3097_p7 = por %p3096_p5, %p3095_p3 }
  0x49   : > { %p3091_p0 = pneg %p3090_p8 }
  0x4b   : > { %p3098_p10 = pnand %p3097_p7, %p3091_p0 }
  0x4d   : > { %3101 = shalt.err (!%p3098_p10)
}
  0x4e   : > { %2866 = dma.hbm_to_vmem [thread:$0]  (!%p3422_p11), %s4293_s2, 16, %s3426_s11, [#allocation6]  }
  0x4f   : > { %s3102_s8 = scalar_lea.hbm %s4276_s3, 3072 }
  0x50   : > { %p3103_p9 = scmp.ne.s32.totalorder %s4276_s3, %s3102_s8  ;;  %p3109_p1 = scmp.lt.u32.totalorder %s3102_s8, %s4276_s3 }
  0x52   : > { %p3105_p12 = pnand %p3103_p9, %p3438_p13 }
  0x54   : > { %p3106_p2 = pneg %p3105_p12 }
  0x56   : > { %p3111_p4 = pnand %p3109_p1, %p3106_p2 }
  0x58   : > { %3114 = shalt.err (!%p3111_p4)
}
  0x59   : > { %s3115_s11 = scalar_lea.vmem %s3428_s14, 3072  ;;  %p3123_p3 = scmp.lt.s32.totalorder %s3428_s14, %s3428_s14 }
  0x5a   : > { %p3116_p6 = scmp.ne.s32.totalorder %s3428_s14, %s3115_s11  ;;  %p3124_p5 = scmp.lt.s32.totalorder %s3115_s11, %s3115_s11 }
  0x5c   : > { %p3118_p8 = pnand %p3116_p6, %p3438_p13  ;;  %p3125_p7 = por %p3124_p5, %p3123_p3 }
  0x5e   : > { %p3119_p0 = pneg %p3118_p8 }
  0x60   : > { %p3126_p10 = pnand %p3125_p7, %p3119_p0 }
  0x62   : > { %3129 = shalt.err (!%p3126_p10)
}
  0x63   : > { %s3315_s28 = smov 192   ;;  %s3316_s20 = smov 12  }
  0x64   : > { %2869 = dma.hbm_to_vmem [thread:$0]  (!%p3422_p11), %s4276_s3, 3072, %s3428_s14, [#allocation9], %s3315_s28, %s3315_s28, %s3316_s20  }
  0x65   : > { %s49_s17 = sadd.s32 1, %s3298_s23  ;;  %s40_s19 = sadd.s32 1, %s3306_s25 }
  0x66   : > { %p56_p13 = scmp.ne.s32.totalorder %s3298_s23, %s3294_s22  ;;  %p42_p9 = scmp.ge.s32.totalorder %s40_s19, 2 }
  0x67   : > { %p57_p12 = scmp.eq.s32.totalorder %s3310_s26, 0  ;;  %p4294_p2 = scmp.eq.s32.totalorder %s3392_s27, 1 }
  0x68   : > { %p2887_p4 = scmp.lt.s32.totalorder %s3310_s26, 2  ;;  %s4314_s19 = smov (%p42_p9, %s40_s19), 0 }
  0x69   : > { %p3508_p1 = por %p4294_p2, %p56_p13  ;;  %p58_p6 = por %p57_p12, %p56_p13 }
  0x6a   : > { %s268_s12 = sand.u32 1, %s3298_s23   ;;  %s44_s10 = ssub.s32 %s3306_s25, %s4314_s19 }
  0x6b   : > { %p47_p8 = scmp.eq.s32.totalorder %s44_s10, 0  ;;  %s2144_s14 = sshll.u32 %s268_s12, 7 }
  0x6c   : > { %s2288_s13 = sshll.u32 %s3306_s25, 11  ;;  %s4296_s0 = sld [smem:[#allocation19_spill]] }
  0x6d   : > { %s3520_s15 = scalar_select %p47_p8, %s3298_s23, %s49_s17  }
  0x6e   : > { %s272_s20 = scalar_lea.vmem [#allocation2], %s2144_s14  ;;  %p3531_p11 = pnand %p2887_p4, %p58_p6 }
  0x6f   : > { %s281_s16 = sshll.u32 %s272_s20, 4  ;;  %s3535_s17 = scalar_lea.sflag [#allocation3], %s268_s12  ;;  %s3527_s16 = int_to_ptr.vmem [resolvable:$true] %s281_s16 }
  0x70   : > { %p3132_p3 = pneg %p3531_p11 }
  0x72   : > { %s3525_s28 = scalar_lea.hbm %s4296_s0, %s2288_s13  ;;  %s3135_s9 = scalar_lea.hbm %s4296_s0, 4096 }
  0x73   : > { %s3130_s10 = scalar_lea.hbm %s3525_s28, 2048  ;;  %p3136_p10 = scmp.lt.u32.totalorder %s3525_s28, %s4296_s0 }
  0x74   : > { %p3131_p0 = scmp.ne.s32.totalorder %s3525_s28, %s3130_s10  ;;  %p3137_p13 = scmp.lt.u32.totalorder %s3135_s9, %s3130_s10 }
  0x75   : > { %p3139_p12 = scmp.lt.u32.totalorder %s3130_s10, %s3525_s28 }
  0x76   : > { %p3133_p5 = pnand %p3132_p3, %p3131_p0  ;;  %p3138_p9 = por %p3137_p13, %p3136_p10 }
  0x78   : > { %p3134_p7 = pneg %p3133_p5  ;;  %p3140_p2 = por %p3139_p12, %p3138_p9 }
  0x7a   : > { %p3141_p4 = pnand %p3140_p2, %p3134_p7 }
  0x7c   : > { %3144 = shalt.err (!%p3141_p4)
}
  0x7d   : > { %s3145_s12 = scalar_lea.vmem %s3527_s16, 2048  ;;  %s3317_s14 = smov [#allocation2]  }
  0x7e   : > { %p3146_p6 = scmp.ne.s32.totalorder %s3527_s16, %s3145_s12  ;;  %s3150_s13 = sshll.u32 %s3317_s14, 4  ;;  %s3151_s13 = int_to_ptr.vmem [resolvable:$false] %s3150_s13 }
  0x7f   : > { %s3152_s11 = scalar_lea.vmem %s3151_s13, 4096  ;;  %p3153_p5 = scmp.lt.s32.totalorder %s3527_s16, %s3151_s13 }
  0x80   : > { %p3148_p8 = pnand %p3146_p6, %p3132_p3  ;;  %p3154_p10 = scmp.lt.s32.totalorder %s3152_s11, %s3145_s12 }
  0x82   : > { %p3149_p0 = pneg %p3148_p8  ;;  %p3155_p13 = por %p3154_p10, %p3153_p5 }
  0x84   : > { %p3156_p9 = pnand %p3155_p13, %p3149_p0 }
  0x86   : > { %3159 = shalt.err (!%p3156_p9)
}
  0x87   : > { %s3318_s10 = smov 64   ;;  %s3319_s9 = smov 4  }
  0x88   : > { %2873 = dma.hbm_to_vmem [thread:$0]  (!%p3531_p11), %s3525_s28, 2048, %s3527_s16, %s3535_s17, %s3318_s10, %s3318_s10, %s3319_s9  }
  0x89   : > { %p4298_p3 = scmp.ne.s32.totalorder %s4289_s7, 0 }
  0x8a   : > { %s3566_s20 = sand.u32 (!%p4298_p3), 1, %s3294_s22   ;;  %p4299_p7 = scmp.ne.s32.totalorder (!%p4298_p3), %s4287_s29, 0 }
  0x8b   : > { %293 = sbr.rel (%p4298_p3) target bundleno = 846 (0x34e), region = 36  ;;  %s3569_s12 = sshll.u32 (!%p4298_p3), %s3566_s20, 7 }
  0x8c   : > { %s296_s14 = scalar_lea.sflag (!%p4298_p3), [#allocation3], %s3566_s20  ;;  %s3573_s13 = scalar_lea.vmem (!%p4298_p3), [#allocation2], %s3569_s12 }
  0x92   : > { %3269 = dma.done.wait (%p4299_p7), %s296_s14, 2048  }
  0x93   : > { %3271 = vsyncadd (%p4299_p7), %s296_s14, 4294965248  ;;  %p4300_p11 = scmp.eq.s32.totalorder %s3392_s27, 0 }
  0x95   : > { %3273 = dma.done.wait (%p4300_p11), [#allocation6], 32   ;;  %p4301_p12 = pmov %p4300_p11 }
  0x96   : > { %p4302_p2 = pmov %p4300_p11 }
  0x97   : > { %3275 = vsyncadd (%p4301_p12), [#allocation6], 4294967264 }
  0x98   : > { %3277 = dma.done.wait (%p4302_p2), [#allocation9], 3072   ;;  %p4303_p4 = pmov %p4302_p2 }
  0x99   : > { %v3588_v0 = vld [vmem:[%s3573_s13] sm:$0xff]   ;;  %v3602_v6 = vld [vmem:[%s3573_s13 + $0x8] sm:$0xff]   ;;  %v3614_v10 = vld [vmem:[%s3573_s13 + $0x10] sm:$0xff]   ;;  %s4076_s29 = scalar_lea.vmem [#allocation11], %s3569_s12  ;;  %s4080_s7 = scalar_lea.vmem [#allocation10], %s3569_s12 }
  0x9a   : > { %3279 = vsyncadd (%p4303_p4), [#allocation9], 4294964224  ;;  %v3591_v1 = vld [vmem:[%s3573_s13 + $0x60] sm:$0xff]   ;;  %v2390_v2 = vunpack.c.l.bf16 %v3588_v0  ;;  %v2391_v4 = vunpack.c.h.bf16 %v3588_v0  ;;  %v3605_v7 = vld [vmem:[%s3573_s13 + $0x68] sm:$0xff]   ;;  %v2394_v8 = vunpack.c.l.bf16 %v3602_v6  ;;  %v2395_v9 = vunpack.c.h.bf16 %v3602_v6  ;;  %s4100_s28 = scalar_lea.vmem [#allocation13], %s3569_s12  ;;  %s2385_s18 = sshll.u32 %s3302_s24, 11 }
  0x9b   : > { %v2438_v3 = vunpack.c.l.bf16 %v3591_v1  ;;  %v2439_v5 = vunpack.c.h.bf16 %v3591_v1  ;;  %v2442_v11 = vunpack.c.l.bf16 %v3605_v7  ;;  %v2443_v12 = vunpack.c.h.bf16 %v3605_v7  ;;  %v3629_v15 = vld [vmem:[%s3573_s13 + $0x70] sm:$0xff]   ;;  %v3638_v18 = vld [vmem:[%s3573_s13 + $0x18] sm:$0xff]   ;;  %v3656_v24 = vld [vmem:[%s3573_s13 + $0x20] sm:$0xff]   ;;  %s1936_s17 = sshll.u32 %s4076_s29, 4  ;;  %s1918_s11 = sshll.u32 %s4080_s7, 4  ;;  %s4140_s17 = int_to_ptr.vmem [resolvable:$true] %s1936_s17  ;;  %s4149_s11 = int_to_ptr.vmem [resolvable:$true] %s1918_s11 }
  0x9c   : > { %419 = vadd.xlane.f32.xlu0 %v2390_v2  ;;  %v2398_v13 = vunpack.c.l.bf16 %v3614_v10  ;;  %v2399_v14 = vunpack.c.h.bf16 %v3614_v10  ;;  %v2446_v16 = vunpack.c.l.bf16 %v3629_v15  ;;  %v2447_v17 = vunpack.c.h.bf16 %v3629_v15  ;;  %v3647_v21 = vld [vmem:[%s3573_s13 + $0x78] sm:$0xff]   ;;  %v3665_v27 = vld [vmem:[%s3573_s13 + $0x28] sm:$0xff]   ;;  %v3674_v30 = vld [vmem:[%s3573_s13 + $0x30] sm:$0xff]   ;;  %s4135_s12 = scalar_lea.hbm %s4278_s5, %s2385_s18  ;;  %s1954_s14 = sshll.u32 %s4100_s28, 4  ;;  %s4159_s14 = int_to_ptr.vmem [resolvable:$true] %s1954_s14 }
  0x9d   : > { %467 = vadd.xlane.f32.xlu1 %v2438_v3  ;;  %v2402_v19 = vunpack.c.l.bf16 %v3638_v18  ;;  %v2403_v20 = vunpack.c.h.bf16 %v3638_v18  ;;  %v2450_v22 = vunpack.c.l.bf16 %v3647_v21  ;;  %v2451_v23 = vunpack.c.h.bf16 %v3647_v21  ;;  %v3683_v33 = vld [vmem:[%s3573_s13 + $0x38] sm:$0xff]   ;;  %v3692_v36 = vld [vmem:[%s3573_s13 + $0x40] sm:$0xff]   ;;  %v3701_v39 = vld [vmem:[%s3573_s13 + $0x48] sm:$0xff]   ;;  %s4147_s16 = scalar_lea.hbm %s4277_s4, %s2385_s18  ;;  %s4157_s0 = scalar_lea.hbm %s4279_s6, %s2385_s18 }
  0x9e   : > { %v2406_v25 = vunpack.c.l.bf16 %v3656_v24  ;;  %v2407_v26 = vunpack.c.h.bf16 %v3656_v24  ;;  %v2410_v28 = vunpack.c.l.bf16 %v3665_v27  ;;  %v2411_v29 = vunpack.c.h.bf16 %v3665_v27  ;;  %v3710_v42 = vld [vmem:[%s3573_s13 + $0x50] sm:$0xff]   ;;  %v3719_v45 = vld [vmem:[%s3573_s13 + $0x58] sm:$0xff]   ;;  %v2953_v50 = vld [vmem:[#allocation8 + $0x1c] ss:$12 sps:$4 sm:$0xff]   ;;  %s4304_s24 = sand.u32 1, %s3392_s27   ;;  %s3160_s1 = scalar_lea.vmem %s4140_s17, 2048 }
  0x9f   : > { %v2414_v31 = vunpack.c.l.bf16 %v3674_v30  ;;  %v2415_v32 = vunpack.c.h.bf16 %v3674_v30  ;;  %v2418_v34 = vunpack.c.l.bf16 %v3683_v33  ;;  %v2419_v35 = vunpack.c.h.bf16 %v3683_v33  ;;  %v2950_v48 = vld [vmem:[#allocation8 + $0x4] ss:$12 sps:$4 sm:$0xff]   ;;  %v2952_v49 = vld [vmem:[#allocation8] ss:$12 sps:$4 sm:$0xff]   ;;  %s4166_s13 = scalar_lea.sflag [#allocation12], %s4304_s24  ;;  %p3161_p6 = scmp.ne.s32.totalorder %s4140_s17, %s3160_s1 }
  0xa0   : > { %421 = vadd.xlane.f32.xlu0 %v2391_v4  ;;  %v2422_v37 = vunpack.c.l.bf16 %v3692_v36  ;;  %v2423_v38 = vunpack.c.h.bf16 %v3692_v36  ;;  %v2426_v40 = vunpack.c.l.bf16 %v3701_v39  ;;  %v2427_v41 = vunpack.c.h.bf16 %v3701_v39  ;;  %1026 = vmatprep.subr.bf16.mxu0 %v2950_v48 }
  0xa1   : > { %469 = vadd.xlane.f32.xlu1 %v2439_v5  ;;  %v2430_v43 = vunpack.c.l.bf16 %v3710_v42  ;;  %v2431_v44 = vunpack.c.h.bf16 %v3710_v42  ;;  %v2434_v46 = vunpack.c.l.bf16 %v3719_v45  ;;  %v2435_v47 = vunpack.c.h.bf16 %v3719_v45  ;;  %2824 = vmatprep.subr.bf16.mxu1 %v2950_v48  ;;  %p3162_p8 = pnand %p3161_p6, %p3508_p1 }
  0xa2   : > { %1027 = vmatpush1.bf16.msra.mxu0 %v2952_v49  ;;  %2832 = vmatpush1.bf16.msra.mxu1 %v2952_v49 }
  0xa3   : > { %1028 = vmatprep.subr.bf16.mxu0 %v2953_v50  ;;  %2825 = vmatprep.subr.bf16.mxu1 %v2953_v50  ;;  %p3163_p0 = pneg %p3162_p8 }
  0xa4   : > { %423 = vadd.xlane.f32.xlu0 %v2394_v8 }
  0xa5   : > { %425 = vadd.xlane.f32.xlu1 %v2395_v9 }
  0xa8   : > { %471 = vadd.xlane.f32.xlu0 %v2442_v11 }
  0xa9   : > { %473 = vadd.xlane.f32.xlu1 %v2443_v12 }
  0xac   : > { %427 = vadd.xlane.f32.xlu0 %v2398_v13 }
  0xad   : > { %429 = vadd.xlane.f32.xlu1 %v2399_v14 }
  0xb0   : > { %475 = vadd.xlane.f32.xlu0 %v2446_v16 }
  0xb1   : > { %477 = vadd.xlane.f32.xlu1 %v2447_v17 }
  0xb4   : > { %431 = vadd.xlane.f32.xlu0 %v2402_v19 }
  0xb5   : > { %433 = vadd.xlane.f32.xlu1 %v2403_v20 }
  0xb8   : > { %479 = vadd.xlane.f32.xlu0 %v2450_v22 }
  0xb9   : > { %481 = vadd.xlane.f32.xlu1 %v2451_v23 }
  0xbc   : > { %435 = vadd.xlane.f32.xlu0 %v2406_v25 }
  0xbd   : > { %437 = vadd.xlane.f32.xlu1 %v2407_v26 }
  0xc0   : > { %439 = vadd.xlane.f32.xlu0 %v2410_v28 }
  0xc1   : > { %441 = vadd.xlane.f32.xlu1 %v2411_v29 }
  0xc4   : > { %443 = vadd.xlane.f32.xlu0 %v2414_v31 }
  0xc5   : > { %445 = vadd.xlane.f32.xlu1 %v2415_v32 }
  0xc8   : > { %447 = vadd.xlane.f32.xlu0 %v2418_v34 }
  0xc9   : > { %449 = vadd.xlane.f32.xlu1 %v2419_v35 }
  0xcc   : > { %451 = vadd.xlane.f32.xlu0 %v2422_v37 }
  0xcd   : > { %453 = vadd.xlane.f32.xlu1 %v2423_v38 }
  0xd0   : > { %455 = vadd.xlane.f32.xlu0 %v2426_v40 }
  0xd1   : > { %457 = vadd.xlane.f32.xlu1 %v2427_v41 }
  0xd4   : > { %459 = vadd.xlane.f32.xlu0 %v2430_v43 }
  0xd5   : > { %461 = vadd.xlane.f32.xlu1 %v2431_v44 }
  0xd8   : > { %463 = vadd.xlane.f32.xlu0 %v2434_v46 }
  0xd9   : > { %465 = vadd.xlane.f32.xlu1 %v2435_v47 }
 0x129   : > { %v420_v51 = vpop.xlane.xlu0 %419 }
 0x12a   : > { %v468_v52 = vpop.xlane.xlu1 %467  ;;  %v484_v53 = vmul.f32 0.0078125, %v420_v51 }
 0x12b   : > { %v508_v54 = vmul.f32 0.0078125, %v468_v52 }
 0x12c   : > { %v3733_v55 = vsub.f32 %v2390_v2, %v484_v53 }
 0x12d   : > { %v3737_v56 = vsub.f32 %v2438_v3, %v508_v54  ;;  %v422_v57 = vpop.xlane.xlu0 %421 }
 0x12e   : > { %v470_v58 = vpop.xlane.xlu1 %469  ;;  %v485_v59 = vmul.f32 0.0078125, %v422_v57  ;;  %v548_v60 = vmul.f32 %v3733_v55, %v3733_v55 }
 0x12f   : > { %v509_v61 = vmul.f32 0.0078125, %v470_v58  ;;  %v572_v2 = vmul.f32 %v3737_v56, %v3737_v56 }
 0x130   : > { %v3743_v62 = vsub.f32 %v2391_v4, %v485_v59  ;;  %580 = vadd.xlane.f32.xlu0 %v548_v60 }
 0x131   : > { %v3747_v63 = vsub.f32 %v2439_v5, %v509_v61  ;;  %v424_v3 = vpop.xlane.xlu0 %423 }
 0x132   : > { %v426_v48 = vpop.xlane.xlu1 %425  ;;  %v486_v49 = vmul.f32 0.0078125, %v424_v3  ;;  %v549_v50 = vmul.f32 %v3743_v62, %v3743_v62  ;;  %v2955_v3 = vld [vmem:[#allocation8 + $0x18] ss:$12 sps:$4 sm:$0xff]  }
 0x133   : > { %v487_v51 = vmul.f32 0.0078125, %v426_v48  ;;  %v573_v4 = vmul.f32 %v3747_v63, %v3747_v63  ;;  %1029 = vmatpush1.bf16.msra.mxu0 %v2955_v3  ;;  %2833 = vmatpush1.bf16.msra.mxu1 %v2955_v3 }
 0x134   : > { %v3755_v0 = vsub.f32 %v2394_v8, %v486_v49  ;;  %628 = vadd.xlane.f32.xlu0 %v572_v2  ;;  %582 = vadd.xlane.f32.xlu1 %v549_v50 }
 0x135   : > { %v3759_v1 = vsub.f32 %v2395_v9, %v487_v51  ;;  %v472_v5 = vpop.xlane.xlu0 %471 }
 0x136   : > { %v474_v52 = vpop.xlane.xlu1 %473  ;;  %v510_v53 = vmul.f32 0.0078125, %v472_v5  ;;  %v550_v54 = vmul.f32 %v3755_v0, %v3755_v0 }
 0x137   : > { %v511_v57 = vmul.f32 0.0078125, %v474_v52  ;;  %v551_v9 = vmul.f32 %v3759_v1, %v3759_v1 }
 0x138   : > { %v3767_v8 = vsub.f32 %v2442_v11, %v510_v53  ;;  %630 = vadd.xlane.f32.xlu1 %v573_v4  ;;  %584 = vadd.xlane.f32.xlu0 %v550_v54  ;;  %v2958_v54 = vld [vmem:[#allocation8 + $0x30] ss:$12 sps:$4 sm:$0xff]  }
 0x139   : > { %v3771_v6 = vsub.f32 %v2443_v12, %v511_v57  ;;  %v428_v58 = vpop.xlane.xlu0 %427 }
 0x13a   : > { %v430_v59 = vpop.xlane.xlu1 %429  ;;  %v488_v60 = vmul.f32 0.0078125, %v428_v58  ;;  %v574_v61 = vmul.f32 %v3767_v8, %v3767_v8 }
 0x13b   : > { %v489_v2 = vmul.f32 0.0078125, %v430_v59  ;;  %v575_v12 = vmul.f32 %v3771_v6, %v3771_v6  ;;  %v2959_v59 = vld [vmem:[#allocation8 + $0x4c] ss:$12 sps:$4 sm:$0xff]  }
 0x13c   : > { %v3779_v11 = vsub.f32 %v2398_v13, %v488_v60  ;;  %586 = vadd.xlane.f32.xlu1 %v551_v9  ;;  %632 = vadd.xlane.f32.xlu0 %v574_v61  ;;  %v2956_v13 = vld [vmem:[#allocation8 + $0x34] ss:$12 sps:$4 sm:$0xff]  }
 0x13d   : > { %v3783_v7 = vsub.f32 %v2399_v14, %v489_v2  ;;  %v476_v48 = vpop.xlane.xlu0 %475  ;;  %1030 = vmatprep.subr.bf16.mxu0 %v2956_v13  ;;  %2826 = vmatprep.subr.bf16.mxu1 %v2956_v13  ;;  %v2961_v2 = vld [vmem:[#allocation8 + $0x48] ss:$12 sps:$4 sm:$0xff]  }
 0x13e   : > { %v478_v49 = vpop.xlane.xlu1 %477  ;;  %v512_v50 = vmul.f32 0.0078125, %v476_v48  ;;  %v552_v51 = vmul.f32 %v3779_v11, %v3779_v11  ;;  %1031 = vmatpush1.bf16.msra.mxu0 %v2958_v54  ;;  %2834 = vmatpush1.bf16.msra.mxu1 %v2958_v54 }
 0x13f   : > { %v513_v4 = vmul.f32 0.0078125, %v478_v49  ;;  %v553_v14 = vmul.f32 %v3783_v7, %v3783_v7  ;;  %1032 = vmatprep.subr.bf16.mxu0 %v2959_v59  ;;  %2827 = vmatprep.subr.bf16.mxu1 %v2959_v59  ;;  %v2962_v49 = vld [vmem:[#allocation8 + $0x64] ss:$12 sps:$4 sm:$0xff]  }
 0x140   : > { %v3791_v5 = vsub.f32 %v2446_v16, %v512_v50  ;;  %634 = vadd.xlane.f32.xlu1 %v575_v12  ;;  %588 = vadd.xlane.f32.xlu0 %v552_v51 }
 0x141   : > { %v3795_v10 = vsub.f32 %v2447_v17, %v513_v4  ;;  %v432_v52 = vpop.xlane.xlu0 %431  ;;  %v2964_v4 = vld [vmem:[#allocation8 + $0x60] ss:$12 sps:$4 sm:$0xff]  }
 0x142   : > { %v434_v53 = vpop.xlane.xlu1 %433  ;;  %v490_v57 = vmul.f32 0.0078125, %v432_v52  ;;  %v576_v9 = vmul.f32 %v3791_v5, %v3791_v5  ;;  %1033 = vmatpush1.bf16.msra.mxu0 %v2961_v2  ;;  %2835 = vmatpush1.bf16.msra.mxu1 %v2961_v2 }
 0x143   : > { %v491_v16 = vmul.f32 0.0078125, %v434_v53  ;;  %v577_v58 = vmul.f32 %v3795_v10, %v3795_v10  ;;  %1034 = vmatprep.subr.bf16.mxu0 %v2962_v49  ;;  %2828 = vmatprep.subr.bf16.mxu1 %v2962_v49  ;;  %v2965_v53 = vld [vmem:[#allocation8 + $0x7c] ss:$12 sps:$4 sm:$0xff]   ;;  %v2971_v49 = vld [vmem:[#allocation8 + $0xac] ss:$12 sps:$4 sm:$0xff]  }
 0x144   : > { %v3803_v15 = vsub.f32 %v2402_v19, %v490_v57  ;;  %590 = vadd.xlane.f32.xlu1 %v553_v14  ;;  %636 = vadd.xlane.f32.xlu0 %v576_v9  ;;  %v2967_v9 = vld [vmem:[#allocation8 + $0x78] ss:$12 sps:$4 sm:$0xff]  }
 0x145   : > { %v3807_v17 = vsub.f32 %v2403_v20, %v491_v16  ;;  %v480_v60 = vpop.xlane.xlu0 %479 }
 0x146   : > { %v482_v61 = vpop.xlane.xlu1 %481  ;;  %v514_v12 = vmul.f32 0.0078125, %v480_v60  ;;  %v554_v3 = vmul.f32 %v3803_v15, %v3803_v15  ;;  %1035 = vmatpush1.bf16.msra.mxu0 %v2964_v4  ;;  %2836 = vmatpush1.bf16.msra.mxu1 %v2964_v4  ;;  %v2968_v60 = vld [vmem:[#allocation8 + $0x94] ss:$12 sps:$4 sm:$0xff]  }
 0x147   : > { %v515_v48 = vmul.f32 0.0078125, %v482_v61  ;;  %v555_v20 = vmul.f32 %v3807_v17, %v3807_v17  ;;  %1036 = vmatprep.subr.bf16.mxu0 %v2965_v53  ;;  %2829 = vmatprep.subr.bf16.mxu1 %v2965_v53  ;;  %v2973_v4 = vld [vmem:[#allocation8 + $0xa8] ss:$12 sps:$4 sm:$0xff]  }
 0x148   : > { %v3815_v18 = vsub.f32 %v2450_v22, %v514_v12  ;;  %638 = vadd.xlane.f32.xlu1 %v577_v58  ;;  %592 = vadd.xlane.f32.xlu0 %v554_v3  ;;  %v2970_v12 = vld [vmem:[#allocation8 + $0x90] ss:$12 sps:$4 sm:$0xff]  }
 0x149   : > { %v3819_v19 = vsub.f32 %v2451_v23, %v515_v48  ;;  %v436_v50 = vpop.xlane.xlu0 %435 }
 0x14a   : > { %v438_v51 = vpop.xlane.xlu1 %437  ;;  %v492_v13 = vmul.f32 0.0078125, %v436_v50  ;;  %v578_v14 = vmul.f32 %v3815_v18, %v3815_v18  ;;  %1037 = vmatpush1.bf16.msra.mxu0 %v2967_v9  ;;  %2837 = vmatpush1.bf16.msra.mxu1 %v2967_v9 }
 0x14b   : > { %v493_v52 = vmul.f32 0.0078125, %v438_v51  ;;  %v579_v23 = vmul.f32 %v3819_v19, %v3819_v19  ;;  %1038 = vmatprep.subr.bf16.mxu0 %v2968_v60  ;;  %2830 = vmatprep.subr.bf16.mxu1 %v2968_v60 }
 0x14c   : > { %v3827_v21 = vsub.f32 %v2406_v25, %v492_v13  ;;  %594 = vadd.xlane.f32.xlu1 %v555_v20  ;;  %640 = vadd.xlane.f32.xlu0 %v578_v14 }
 0x14d   : > { %v3831_v22 = vsub.f32 %v2407_v26, %v493_v52  ;;  %v440_v54 = vpop.xlane.xlu0 %439 }
 0x14e   : > { %v442_v57 = vpop.xlane.xlu1 %441  ;;  %v494_v16 = vmul.f32 0.0078125, %v440_v54  ;;  %v556_v58 = vmul.f32 %v3827_v21, %v3827_v21  ;;  %1039 = vmatpush1.bf16.msra.mxu0 %v2970_v12  ;;  %2838 = vmatpush1.bf16.msra.mxu1 %v2970_v12  ;;  %v3320_v54 = vmov 0  }
 0x14f   : > { %v495_v59 = vmul.f32 0.0078125, %v442_v57  ;;  %v557_v26 = vmul.f32 %v3831_v22, %v3831_v22  ;;  %1040 = vmatprep.subr.bf16.mxu0 %v2971_v49  ;;  %2831 = vmatprep.subr.bf16.mxu1 %v2971_v49 }
 0x150   : > { %v3839_v24 = vsub.f32 %v2410_v28, %v494_v16  ;;  %642 = vadd.xlane.f32.xlu1 %v579_v23  ;;  %596 = vadd.xlane.f32.xlu0 %v556_v58  ;;  %v3885_v58 = vld [vmem:[#allocation8 + $0x8] ss:$12 sps:$4 sm:$0xff]  }
 0x151   : > { %v3843_v25 = vsub.f32 %v2411_v29, %v495_v59  ;;  %v444_v61 = vpop.xlane.xlu0 %443  ;;  %1058 = vmatprep.mubr.bf16.mxu0 %v3320_v54  ;;  %1178 = vmatprep.mubr.bf16.mxu1 %v3320_v54 }
 0x152   : > { %v446_v2 = vpop.xlane.xlu1 %445  ;;  %v496_v3 = vmul.f32 0.0078125, %v444_v61  ;;  %v558_v48 = vmul.f32 %v3839_v24, %v3839_v24  ;;  %1041 = vmatpush1.bf16.msra.mxu0 %v2973_v4  ;;  %2839 = vmatpush1.bf16.msra.mxu1 %v2973_v4 }
 0x153   : > { %v497_v20 = vmul.f32 0.0078125, %v446_v2  ;;  %v559_v29 = vmul.f32 %v3843_v25, %v3843_v25  ;;  %2776 = vmatprep.subr.bf16.mxu1 %v3885_v58 }
 0x154   : > { %v3851_v27 = vsub.f32 %v2414_v31, %v496_v3  ;;  %598 = vadd.xlane.f32.xlu1 %v557_v26  ;;  %600 = vadd.xlane.f32.xlu0 %v558_v48 }
 0x155   : > { %v3855_v28 = vsub.f32 %v2415_v32, %v497_v20  ;;  %v448_v50 = vpop.xlane.xlu0 %447 }
 0x156   : > { %v450_v51 = vpop.xlane.xlu1 %449  ;;  %v498_v13 = vmul.f32 0.0078125, %v448_v50  ;;  %v560_v14 = vmul.f32 %v3851_v27, %v3851_v27 }
 0x157   : > { %v499_v52 = vmul.f32 0.0078125, %v450_v51  ;;  %v561_v32 = vmul.f32 %v3855_v28, %v3855_v28 }
 0x158   : > { %v3863_v30 = vsub.f32 %v2418_v34, %v498_v13  ;;  %602 = vadd.xlane.f32.xlu1 %v559_v29  ;;  %604 = vadd.xlane.f32.xlu0 %v560_v14 }
 0x159   : > { %v3867_v31 = vsub.f32 %v2419_v35, %v499_v52  ;;  %v452_v23 = vpop.xlane.xlu0 %451 }
 0x15a   : > { %v454_v53 = vpop.xlane.xlu1 %453  ;;  %v500_v57 = vmul.f32 0.0078125, %v452_v23  ;;  %v562_v34 = vmul.f32 %v3863_v30, %v3863_v30 }
 0x15b   : > { %v501_v9 = vmul.f32 0.0078125, %v454_v53  ;;  %v563_v16 = vmul.f32 %v3867_v31, %v3867_v31 }
 0x15c   : > { %v3877_v33 = vsub.f32 %v2422_v37, %v500_v57  ;;  %606 = vadd.xlane.f32.xlu1 %v561_v32  ;;  %608 = vadd.xlane.f32.xlu0 %v562_v34 }
 0x15d   : > { %v3881_v35 = vsub.f32 %v2423_v38, %v501_v9  ;;  %v456_v59 = vpop.xlane.xlu0 %455 }
 0x15e   : > { %v458_v26 = vpop.xlane.xlu1 %457  ;;  %v502_v60 = vmul.f32 0.0078125, %v456_v59  ;;  %v564_v61 = vmul.f32 %v3877_v33, %v3877_v33 }
 0x15f   : > { %v503_v2 = vmul.f32 0.0078125, %v458_v26  ;;  %v565_v38 = vmul.f32 %v3881_v35, %v3881_v35 }
 0x160   : > { %v3892_v37 = vsub.f32 %v2426_v40, %v502_v60  ;;  %610 = vadd.xlane.f32.xlu1 %v563_v16  ;;  %612 = vadd.xlane.f32.xlu0 %v564_v61 }
 0x161   : > { %v3896_v36 = vsub.f32 %v2427_v41, %v503_v2  ;;  %v460_v12 = vpop.xlane.xlu0 %459 }
 0x162   : > { %v462_v3 = vpop.xlane.xlu1 %461  ;;  %v504_v48 = vmul.f32 0.0078125, %v460_v12  ;;  %v566_v20 = vmul.f32 %v3892_v37, %v3892_v37 }
 0x163   : > { %v505_v29 = vmul.f32 0.0078125, %v462_v3  ;;  %v567_v41 = vmul.f32 %v3896_v36, %v3896_v36 }
 0x164   : > { %v3904_v40 = vsub.f32 %v2430_v43, %v504_v48  ;;  %614 = vadd.xlane.f32.xlu1 %v565_v38  ;;  %616 = vadd.xlane.f32.xlu0 %v566_v20 }
 0x165   : > { %v3908_v39 = vsub.f32 %v2431_v44, %v505_v29  ;;  %v464_v49 = vpop.xlane.xlu0 %463 }
 0x166   : > { %v466_v50 = vpop.xlane.xlu1 %465  ;;  %v506_v51 = vmul.f32 0.0078125, %v464_v49  ;;  %v568_v4 = vmul.f32 %v3904_v40, %v3904_v40 }
 0x167   : > { %v507_v13 = vmul.f32 0.0078125, %v466_v50  ;;  %v569_v44 = vmul.f32 %v3908_v39, %v3908_v39 }
 0x168   : > { %v3916_v43 = vsub.f32 %v2434_v46, %v506_v51  ;;  %618 = vadd.xlane.f32.xlu1 %v567_v41  ;;  %620 = vadd.xlane.f32.xlu0 %v568_v4 }
 0x169   : > { %v3920_v42 = vsub.f32 %v2435_v47, %v507_v13 }
 0x16a   : > { %v570_v14 = vmul.f32 %v3916_v43, %v3916_v43 }
 0x16b   : > { %v571_v52 = vmul.f32 %v3920_v42, %v3920_v42 }
 0x16c   : > { %622 = vadd.xlane.f32.xlu1 %v569_v44  ;;  %624 = vadd.xlane.f32.xlu0 %v570_v14  ;;  %v3929_v44 = vld [vmem:[#allocation5] ss:$0 sm:$0xff] }
 0x170   : > { %626 = vadd.xlane.f32.xlu1 %v571_v52 }
 0x1bd   : > { %v581_v46 = vpop.xlane.xlu0 %580 }
 0x1be   : > { %v644_v32 = vmul.f32 0.0078125, %v581_v46 }
 0x1c0   : > { %v676_v23 = vadd.f32 1e-05, %v644_v32 }
 0x1c1   : > { %v583_v53 = vpop.xlane.xlu1 %582  ;;  %v629_v57 = vpop.xlane.xlu0 %628 }
 0x1c2   : > { %2982 = vrsqrt.f32 %v676_v23  ;;  %v645_v45 = vmul.f32 0.0078125, %v583_v53  ;;  %v668_v47 = vmul.f32 0.0078125, %v629_v57 }
 0x1c4   : > { %v677_v34 = vadd.f32 1e-05, %v645_v45  ;;  %v700_v9 = vadd.f32 1e-05, %v668_v47 }
 0x1c5   : > { %v631_v16 = vpop.xlane.xlu1 %630  ;;  %v585_v59 = vpop.xlane.xlu0 %584 }
 0x1c6   : > { %2984 = vrsqrt.f32 %v677_v34  ;;  %v669_v26 = vmul.f32 0.0078125, %v631_v16  ;;  %v646_v60 = vmul.f32 0.0078125, %v585_v59 }
 0x1c7   : > { %2986 = vrsqrt.f32 %v700_v9 }
 0x1c8   : > { %v701_v61 = vadd.f32 1e-05, %v669_v26  ;;  %v678_v2 = vadd.f32 1e-05, %v646_v60 }
 0x1c9   : > { %v587_v38 = vpop.xlane.xlu1 %586  ;;  %v633_v12 = vpop.xlane.xlu0 %632 }
 0x1ca   : > { %2988 = vrsqrt.f32 %v701_v61  ;;  %v647_v3 = vmul.f32 0.0078125, %v587_v38  ;;  %v670_v48 = vmul.f32 0.0078125, %v633_v12 }
 0x1cb   : > { %2990 = vrsqrt.f32 %v678_v2 }
 0x1cc   : > { %v2983_v20 = vpop.eup %2982  ;;  %v679_v29 = vadd.f32 1e-05, %v647_v3  ;;  %v702_v41 = vadd.f32 1e-05, %v670_v48 }
 0x1cd   : > { %v635_v49 = vpop.xlane.xlu1 %634  ;;  %v589_v50 = vpop.xlane.xlu0 %588  ;;  %v740_v51 = vmul.f32 %v2983_v20, %v3733_v55  ;;  %v3933_v55 = vld [vmem:[#allocation7] ss:$0 sm:$0xff] }
 0x1ce   : > { %2992 = vrsqrt.f32 %v679_v29  ;;  %v671_v4 = vmul.f32 0.0078125, %v635_v49  ;;  %v648_v13 = vmul.f32 0.0078125, %v589_v50 }
 0x1cf   : > { %2994 = vrsqrt.f32 %v702_v41  ;;  %v779_v45 = vmul.f32 %v3929_v44, %v740_v51 }
 0x1d0   : > { %v2985_v14 = vpop.eup %2984  ;;  %v703_v52 = vadd.f32 1e-05, %v671_v4  ;;  %v680_v46 = vadd.f32 1e-05, %v648_v13 }
 0x1d1   : > { %v2987_v32 = vpop.eup %2986  ;;  %v591_v23 = vpop.xlane.xlu1 %590  ;;  %v741_v57 = vmul.f32 %v2985_v14, %v3743_v62  ;;  %v818_v62 = vadd.f32 %v3933_v55, %v779_v45 }
 0x1d2   : > { %v637_v53 = vpop.xlane.xlu0 %636  ;;  %2996 = vrsqrt.f32 %v703_v52  ;;  %v649_v47 = vmul.f32 0.0078125, %v591_v23  ;;  %v764_v9 = vmul.f32 %v2987_v32, %v3737_v56 }
 0x1d3   : > { %v672_v34 = vmul.f32 0.0078125, %v637_v53  ;;  %2998 = vrsqrt.f32 %v680_v46  ;;  %v780_v16 = vmul.f32 %v3929_v44, %v741_v57 }
 0x1d4   : > { %v2989_v59 = vpop.eup %2988  ;;  %v681_v26 = vadd.f32 1e-05, %v649_v47  ;;  %v803_v48 = vmul.f32 %v3929_v44, %v764_v9  ;;  %v2975_v47 = vld [vmem:[#allocation8 + $0x20] ss:$12 sps:$4 sm:$0xff]  }
 0x1d5   : > { %v704_v60 = vadd.f32 1e-05, %v672_v34  ;;  %v2991_v61 = vpop.eup %2990  ;;  %v639_v2 = vpop.xlane.xlu1 %638  ;;  %v819_v12 = vadd.f32 %v3933_v55, %v780_v16  ;;  %v765_v3 = vmul.f32 %v2989_v59, %v3747_v63 }
 0x1d6   : > { %v593_v38 = vpop.xlane.xlu0 %592  ;;  %3000 = vrsqrt.f32 %v681_v26  ;;  %v673_v20 = vmul.f32 0.0078125, %v639_v2  ;;  %v742_v49 = vmul.f32 %v2991_v61, %v3755_v0  ;;  %v842_v52 = vadd.f32 %v3933_v55, %v803_v48  ;;  %v2976_v48 = vld [vmem:[#allocation8 + $0x38] ss:$12 sps:$4 sm:$0xff]  }
 0x1d7   : > { %v650_v56 = vmul.f32 0.0078125, %v593_v38  ;;  %3002 = vrsqrt.f32 %v704_v60  ;;  %v3941_v29 = vpack.c.bf16 %v819_v12, %v818_v62  ;;  %v804_v41 = vmul.f32 %v3929_v44, %v765_v3 }
 0x1d8   : > { %v2993_v50 = vpop.eup %2992  ;;  %v705_v51 = vadd.f32 1e-05, %v673_v20  ;;  %v781_v23 = vmul.f32 %v3929_v44, %v742_v49 }
 0x1d9   : > { %v682_v4 = vadd.f32 1e-05, %v650_v56  ;;  %v2995_v13 = vpop.eup %2994  ;;  %v595_v14 = vpop.xlane.xlu1 %594  ;;  %1059 = vmatmul.mubr.bf16.vlgmr.msra.gmra.mrb[0].mxu0 %v3941_v29  ;;  %v843_v46 = vadd.f32 %v3933_v55, %v804_v41  ;;  %v743_v32 = vmul.f32 %v2993_v50, %v3759_v1 }
 0x1da   : > { %v641_v63 = vpop.xlane.xlu0 %640  ;;  %3004 = vrsqrt.f32 %v705_v51  ;;  %v651_v53 = vmul.f32 0.0078125, %v595_v14  ;;  %1068 = vmatprep.mubr.bf16.mxu0 %v3320_v54  ;;  %v766_v0 = vmul.f32 %v2995_v13, %v3767_v8  ;;  %v820_v61 = vadd.f32 %v3933_v55, %v781_v23  ;;  %v2977_v23 = vld [vmem:[#allocation8 + $0x50] ss:$12 sps:$4 sm:$0xff]  }
 0x1db   : > { %v674_v57 = vmul.f32 0.0078125, %v641_v63  ;;  %3006 = vrsqrt.f32 %v682_v4  ;;  %v3952_v45 = vpack.c.bf16 %v843_v46, %v842_v52  ;;  %v782_v34 = vmul.f32 %v3929_v44, %v743_v32 }
 0x1dc   : > { %v2997_v9 = vpop.eup %2996  ;;  %v683_v16 = vadd.f32 1e-05, %v651_v53  ;;  %v805_v38 = vmul.f32 %v3929_v44, %v766_v0 }
 0x1dd   : > { %v706_v59 = vadd.f32 1e-05, %v674_v57  ;;  %v2999_v26 = vpop.eup %2998  ;;  %v643_v1 = vpop.xlane.xlu1 %642  ;;  %1179 = vmatmul.mubr.bf16.vlgmr.msra.gmra.mrb[0].mxu1 %v3952_v45  ;;  %v821_v2 = vadd.f32 %v3933_v55, %v782_v34  ;;  %v767_v8 = vmul.f32 %v2997_v9, %v3771_v6 }
 0x1de   : > { %v597_v60 = vpop.xlane.xlu0 %596  ;;  %3008 = vrsqrt.f32 %v683_v16  ;;  %v675_v62 = vmul.f32 0.0078125, %v643_v1  ;;  %2777 = vmatpush3.bf16.msra.mxu1 %v3885_v58  ;;  %1188 = vmatprep.mubr.bf16.mxu1 %v3320_v54  ;;  %v744_v56 = vmul.f32 %v2999_v26, %v3779_v11  ;;  %v844_v4 = vadd.f32 %v3933_v55, %v805_v38 }
 0x1df   : > { %v652_v12 = vmul.f32 0.0078125, %v597_v60  ;;  %3010 = vrsqrt.f32 %v706_v59  ;;  %2778 = vmatprep.subr.bf16.mxu1 %v2975_v47  ;;  %v3962_v3 = vpack.c.bf16 %v821_v2, %v820_v61  ;;  %v806_v20 = vmul.f32 %v3929_v44, %v767_v8  ;;  %v2978_v61 = vld [vmem:[#allocation8 + $0x68] ss:$12 sps:$4 sm:$0xff]  }
 0x1e0   : > { %v3001_v41 = vpop.eup %3000  ;;  %v707_v6 = vadd.f32 1e-05, %v675_v62  ;;  %v783_v63 = vmul.f32 %v3929_v44, %v744_v56 }
 0x1e1   : > { %v684_v49 = vadd.f32 1e-05, %v652_v12  ;;  %v3003_v50 = vpop.eup %3002  ;;  %v599_v51 = vpop.xlane.xlu1 %598  ;;  %1069 = vmatmul.mubr.bf16.gmra.mrb[4].mxu0 %v3962_v3  ;;  %v845_v13 = vadd.f32 %v3933_v55, %v806_v20  ;;  %v745_v14 = vmul.f32 %v3001_v41, %v3783_v7 }
 0x1e2   : > { %v601_v58 = vpop.xlane.xlu0 %600  ;;  %3012 = vrsqrt.f32 %v707_v6  ;;  %v653_v52 = vmul.f32 0.0078125, %v599_v51  ;;  %2779 = vmatpush3.bf16.msra.mxu1 %v2975_v47  ;;  %1078 = vmatprep.mubr.bf16.mxu0 %v3320_v54  ;;  %v768_v46 = vmul.f32 %v3003_v50, %v3791_v5  ;;  %v822_v16 = vadd.f32 %v3933_v55, %v783_v63 }
 0x1e3   : > { %v654_v11 = vmul.f32 0.0078125, %v601_v58  ;;  %3014 = vrsqrt.f32 %v684_v49  ;;  %2780 = vmatprep.subr.bf16.mxu1 %v2976_v48  ;;  %v3973_v32 = vpack.c.bf16 %v845_v13, %v844_v4  ;;  %v784_v53 = vmul.f32 %v3929_v44, %v745_v14  ;;  %v2979_v58 = vld [vmem:[#allocation8 + $0x80] ss:$12 sps:$4 sm:$0xff]  }
 0x1e4   : > { %v3005_v57 = vpop.eup %3004  ;;  %v685_v0 = vadd.f32 1e-05, %v653_v52  ;;  %v807_v26 = vmul.f32 %v3929_v44, %v768_v46 }
 0x1e5   : > { %v686_v7 = vadd.f32 1e-05, %v654_v11  ;;  %v3007_v34 = vpop.eup %3006  ;;  %v603_v9 = vpop.xlane.xlu1 %602  ;;  %1189 = vmatmul.mubr.bf16.gmra.mrb[4].mxu1 %v3973_v32  ;;  %v823_v59 = vadd.f32 %v3933_v55, %v784_v53  ;;  %v769_v5 = vmul.f32 %v3005_v57, %v3795_v10 }
 0x1e6   : > { %v605_v47 = vpop.xlane.xlu0 %604  ;;  %3016 = vrsqrt.f32 %v685_v0  ;;  %v655_v1 = vmul.f32 0.0078125, %v603_v9  ;;  %2781 = vmatpush3.bf16.msra.mxu1 %v2976_v48  ;;  %1198 = vmatprep.mubr.bf16.mxu1 %v3320_v54  ;;  %v746_v8 = vmul.f32 %v3007_v34, %v3803_v15  ;;  %v846_v48 = vadd.f32 %v3933_v55, %v807_v26 }
 0x1e7   : > { %3018 = vrsqrt.f32 %v686_v7  ;;  %2782 = vmatprep.subr.bf16.mxu1 %v2977_v23  ;;  %v3982_v60 = vpack.c.bf16 %v823_v59, %v822_v16  ;;  %v808_v2 = vmul.f32 %v3929_v44, %v769_v5  ;;  %v656_v12 = vmul.f32 0.0078125, %v605_v47  ;;  %v2980_v7 = vld [vmem:[#allocation8 + $0x98] ss:$12 sps:$4 sm:$0xff]  }
 0x1e8   : > { %v3009_v38 = vpop.eup %3008  ;;  %v687_v62 = vadd.f32 1e-05, %v655_v1  ;;  %v785_v49 = vmul.f32 %v3929_v44, %v746_v8 }
 0x1e9   : > { %v3011_v10 = vpop.eup %3010  ;;  %v607_v20 = vpop.xlane.xlu1 %606  ;;  %1079 = vmatmul.mubr.bf16.gmra.mrb[8].mxu0 %v3982_v60  ;;  %v847_v41 = vadd.f32 %v3933_v55, %v808_v2  ;;  %v747_v6 = vmul.f32 %v3009_v38, %v3807_v17  ;;  %v688_v14 = vadd.f32 1e-05, %v656_v12  ;;  %v2981_v12 = vld [vmem:[#allocation8 + $0xb0] ss:$12 sps:$4 sm:$0xff]  }
 0x1ea   : > { %v609_v56 = vpop.xlane.xlu0 %608  ;;  %3020 = vrsqrt.f32 %v687_v62  ;;  %v657_v50 = vmul.f32 0.0078125, %v607_v20  ;;  %2783 = vmatpush3.bf16.msra.mxu1 %v2977_v23  ;;  %1088 = vmatprep.mubr.bf16.mxu0 %v3320_v54  ;;  %v770_v15 = vmul.f32 %v3011_v10, %v3815_v18  ;;  %v824_v46 = vadd.f32 %v3933_v55, %v785_v49 }
 0x1eb   : > { %2784 = vmatprep.subr.bf16.mxu1 %v2978_v61  ;;  %v3993_v51 = vpack.c.bf16 %v847_v41, %v846_v48  ;;  %v786_v4 = vmul.f32 %v3929_v44, %v747_v6  ;;  %v658_v16 = vmul.f32 0.0078125, %v609_v56 }
 0x1ec   : > { %v3013_v13 = vpop.eup %3012  ;;  %v689_v63 = vadd.f32 1e-05, %v657_v50  ;;  %v809_v53 = vmul.f32 %v3929_v44, %v770_v15 }
 0x1ed   : > { %v3015_v52 = vpop.eup %3014  ;;  %v611_v17 = vpop.xlane.xlu1 %610  ;;  %1199 = vmatmul.mubr.bf16.gmra.mrb[8].mxu1 %v3993_v51  ;;  %v825_v23 = vadd.f32 %v3933_v55, %v786_v4  ;;  %v771_v18 = vmul.f32 %v3013_v13, %v3819_v19  ;;  %v690_v56 = vadd.f32 1e-05, %v658_v16 }
 0x1ee   : > { %v613_v11 = vpop.xlane.xlu0 %612  ;;  %3022 = vrsqrt.f32 %v689_v63  ;;  %v659_v57 = vmul.f32 0.0078125, %v611_v17  ;;  %2785 = vmatpush3.bf16.msra.mxu1 %v2978_v61  ;;  %1208 = vmatprep.mubr.bf16.mxu1 %v3320_v54  ;;  %v748_v9 = vmul.f32 %v3015_v52, %v3827_v21  ;;  %v848_v26 = vadd.f32 %v3933_v55, %v809_v53 }
 0x1ef   : > { %2786 = vmatprep.subr.bf16.mxu1 %v2979_v58  ;;  %v4002_v0 = vpack.c.bf16 %v825_v23, %v824_v46  ;;  %v810_v34 = vmul.f32 %v3929_v44, %v771_v18  ;;  %3024 = vrsqrt.f32 %v688_v14  ;;  %v660_v48 = vmul.f32 0.0078125, %v613_v11 }
 0x1f0   : > { %v3017_v47 = vpop.eup %3016  ;;  %v787_v2 = vmul.f32 %v3929_v44, %v748_v9  ;;  %v691_v8 = vadd.f32 1e-05, %v659_v57 }
 0x1f1   : > { %v3019_v59 = vpop.eup %3018  ;;  %v615_v19 = vpop.xlane.xlu1 %614  ;;  %1089 = vmatmul.mubr.bf16.gmra.mrb[12].mxu0 %v4002_v0  ;;  %v849_v1 = vadd.f32 %v3933_v55, %v810_v34  ;;  %v749_v61 = vmul.f32 %v3017_v47, %v3831_v22  ;;  %v692_v46 = vadd.f32 1e-05, %v660_v48 }
 0x1f2   : > { %v617_v5 = vpop.xlane.xlu0 %616  ;;  %v661_v38 = vmul.f32 0.0078125, %v615_v19  ;;  %2787 = vmatpush3.bf16.msra.mxu1 %v2979_v58  ;;  %1098 = vmatprep.mubr.bf16.mxu0 %v3320_v54  ;;  %v750_v22 = vmul.f32 %v3019_v59, %v3839_v24  ;;  %v826_v15 = vadd.f32 %v3933_v55, %v787_v2  ;;  %3026 = vrsqrt.f32 %v691_v8 }
 0x1f3   : > { %v662_v21 = vmul.f32 0.0078125, %v617_v5  ;;  %2788 = vmatprep.subr.bf16.mxu1 %v2980_v7  ;;  %v4012_v62 = vpack.c.bf16 %v849_v1, %v848_v26  ;;  %v788_v10 = vmul.f32 %v3929_v44, %v749_v61 }
 0x1f4   : > { %v3021_v20 = vpop.eup %3020  ;;  %v693_v6 = vadd.f32 1e-05, %v661_v38  ;;  %v789_v18 = vmul.f32 %v3929_v44, %v750_v22 }
 0x1f5   : > { %v694_v41 = vadd.f32 1e-05, %v662_v21  ;;  %v619_v49 = vpop.xlane.xlu1 %618  ;;  %1209 = vmatmul.mubr.bf16.gmra.mrb[12].mxu1 %v4012_v62  ;;  %v827_v58 = vadd.f32 %v3933_v55, %v788_v10  ;;  %v751_v4 = vmul.f32 %v3021_v20, %v3843_v25 }
 0x1f6   : > { %v621_v50 = vpop.xlane.xlu0 %620  ;;  %v663_v13 = vmul.f32 0.0078125, %v619_v49  ;;  %2789 = vmatpush3.bf16.msra.mxu1 %v2980_v7  ;;  %2792 = vmatprep.mubr.bf16.mxu1 %v3941_v29  ;;  %v828_v59 = vadd.f32 %v3933_v55, %v789_v18 }
 0x1f7   : > { %v664_v14 = vmul.f32 0.0078125, %v621_v50  ;;  %3028 = vrsqrt.f32 %v694_v41  ;;  %2790 = vmatprep.subr.bf16.mxu1 %v2981_v12  ;;  %v854_v24 = vpack.c.bf16 %v827_v58, %v826_v15  ;;  %v790_v63 = vmul.f32 %v3929_v44, %v751_v4 }
 0x1f8   : > { %v3023_v52 = vpop.eup %3022  ;;  %3030 = vrsqrt.f32 %v690_v56  ;;  %v695_v17 = vadd.f32 1e-05, %v663_v13 }
 0x1f9   : > { %v696_v11 = vadd.f32 1e-05, %v664_v14  ;;  %3032 = vrsqrt.f32 %v693_v6  ;;  %v623_v23 = vpop.xlane.xlu1 %622  ;;  %1099 = vmatmul.mubr.bf16.gmra.mrb[16].mxu0 %v854_v24  ;;  %v3025_v53 = vpop.eup %3024  ;;  %v829_v7 = vadd.f32 %v3933_v55, %v790_v63  ;;  %v753_v34 = vmul.f32 %v3023_v52, %v3855_v28 }
 0x1fa   : > { %v625_v25 = vpop.xlane.xlu0 %624  ;;  %3034 = vrsqrt.f32 %v695_v17  ;;  %v665_v57 = vmul.f32 0.0078125, %v623_v23  ;;  %2791 = vmatpush3.bf16.msra.mxu1 %v2981_v12  ;;  %1108 = vmatprep.mubr.bf16.mxu0 %v3320_v54  ;;  %v752_v19 = vmul.f32 %v3025_v53, %v3851_v27 }
 0x1fb   : > { %v666_v29 = vmul.f32 0.0078125, %v625_v25  ;;  %3036 = vrsqrt.f32 %v696_v11  ;;  %v855_v26 = vpack.c.bf16 %v829_v7, %v828_v59  ;;  %v792_v1 = vmul.f32 %v3929_v44, %v753_v34 }
 0x1fc   : > { %v697_v9 = vadd.f32 1e-05, %v665_v57  ;;  %3038 = vrsqrt.f32 %v692_v46  ;;  %v3027_v61 = vpop.eup %3026  ;;  %v791_v8 = vmul.f32 %v3929_v44, %v752_v19 }
 0x1fd   : > { %v698_v47 = vadd.f32 1e-05, %v666_v29  ;;  %v627_v16 = vpop.xlane.xlu1 %626  ;;  %2793 = vmatmul.mubr.bf16.vlgmr.msra.gmra.mrb[16].mxu1 %v3962_v3  ;;  %v831_v21 = vadd.f32 %v3933_v55, %v792_v1 }
 0x1fe   : > { %3040 = vrsqrt.f32 %v697_v9  ;;  %v667_v5 = vmul.f32 0.0078125, %v627_v16  ;;  %2796 = vmatprep.mubr.bf16.mxu1 %v3982_v60  ;;  %v755_v60 = vmul.f32 %v3027_v61, %v3867_v31  ;;  %v830_v56 = vadd.f32 %v3933_v55, %v791_v8 }
 0x1ff   : > { %3042 = vrsqrt.f32 %v698_v47 }
 0x200   : > { %v699_v28 = vadd.f32 1e-05, %v667_v5  ;;  %v856_v49 = vpack.c.bf16 %v831_v21, %v830_v56  ;;  %v794_v31 = vmul.f32 %v3929_v44, %v755_v60 }
 0x201   : > { %v3029_v2 = vpop.eup %3028  ;;  %1109 = vmatmul.mubr.bf16.gmra.mrb[20].mxu0 %v855_v26 }
 0x202   : > { %v3031_v38 = vpop.eup %3030  ;;  %3044 = vrsqrt.f32 %v699_v28  ;;  %1118 = vmatprep.mubr.bf16.mxu0 %v3320_v54  ;;  %v758_v27 = vmul.f32 %v3029_v2, %v3892_v37 }
 0x203   : > { %v3033_v3 = vpop.eup %3032  ;;  %v754_v48 = vmul.f32 %v3031_v38, %v3863_v30 }
 0x204   : > { %v3035_v12 = vpop.eup %3034  ;;  %v797_v10 = vmul.f32 %v3929_v44, %v758_v27 }
 0x205   : > { %v3037_v20 = vpop.eup %3036  ;;  %2797 = vmatmul.mubr.bf16.gmra.mrb[20].mxu1 %v4002_v0  ;;  %v759_v41 = vmul.f32 %v3035_v12, %v3896_v36  ;;  %v757_v0 = vmul.f32 %v3033_v3, %v3881_v35  ;;  %v793_v30 = vmul.f32 %v3929_v44, %v754_v48  ;;  %v833_v35 = vadd.f32 %v3933_v55, %v794_v31 }
 0x206   : > { %2800 = vmatprep.mubr.bf16.mxu1 %v854_v24  ;;  %v836_v37 = vadd.f32 %v3933_v55, %v797_v10  ;;  %v760_v22 = vmul.f32 %v3037_v20, %v3904_v40  ;;  %v3039_v6 = vpop.eup %3038 }
 0x207   : > { %v798_v50 = vmul.f32 %v3929_v44, %v759_v41  ;;  %v756_v40 = vmul.f32 %v3039_v6, %v3877_v33  ;;  %v796_v11 = vmul.f32 %v3929_v44, %v757_v0 }
 0x208   : > { %v3041_v15 = vpop.eup %3040  ;;  %v799_v58 = vmul.f32 %v3929_v44, %v760_v22 }
 0x209   : > { %v3043_v4 = vpop.eup %3042  ;;  %1119 = vmatmul.mubr.bf16.gmra.mrb[24].mxu0 %v856_v49  ;;  %v837_v36 = vadd.f32 %v3933_v55, %v798_v50  ;;  %v761_v13 = vmul.f32 %v3041_v15, %v3908_v39  ;;  %v832_v39 = vadd.f32 %v3933_v55, %v793_v30  ;;  %v835_v29 = vadd.f32 %v3933_v55, %v796_v11 }
 0x20a   : > { %1128 = vmatprep.mubr.bf16.mxu0 %v3320_v54  ;;  %v838_v14 = vadd.f32 %v3933_v55, %v799_v58  ;;  %v762_v24 = vmul.f32 %v3043_v4, %v3916_v43  ;;  %v795_v43 = vmul.f32 %v3929_v44, %v756_v40 }
 0x20b   : > { %v859_v63 = vpack.c.bf16 %v837_v36, %v836_v37  ;;  %v800_v52 = vmul.f32 %v3929_v44, %v761_v13  ;;  %v857_v18 = vpack.c.bf16 %v833_v35, %v832_v39 }
 0x20c   : > { %v3045_v17 = vpop.eup %3044  ;;  %v801_v46 = vmul.f32 %v3929_v44, %v762_v24  ;;  %v834_v34 = vadd.f32 %v3933_v55, %v795_v43 }
 0x20d   : > { %2801 = vmatmul.mubr.bf16.gmra.mrb[24].mxu1 %v855_v26  ;;  %v839_v23 = vadd.f32 %v3933_v55, %v800_v52  ;;  %v763_v33 = vmul.f32 %v3045_v17, %v3920_v42 }
 0x20e   : > { %2804 = vmatprep.mubr.bf16.mxu1 %v856_v49  ;;  %v840_v25 = vadd.f32 %v3933_v55, %v801_v46  ;;  %v858_v42 = vpack.c.bf16 %v835_v29, %v834_v34 }
 0x20f   : > { %v860_v53 = vpack.c.bf16 %v839_v23, %v838_v14  ;;  %v802_v57 = vmul.f32 %v3929_v44, %v763_v33 }
 0x211   : > { %1129 = vmatmul.mubr.bf16.gmra.mrb[28].mxu0 %v857_v18  ;;  %v841_v7 = vadd.f32 %v3933_v55, %v802_v57 }
 0x212   : > { %1138 = vmatprep.mubr.bf16.mxu0 %v3320_v54 }
 0x213   : > { %v861_v9 = vpack.c.bf16 %v841_v7, %v840_v25 }
 0x215   : > { %2805 = vmatmul.mubr.bf16.gmra.mrb[28].mxu1 %v857_v18 }
 0x216   : > { %2808 = vmatprep.mubr.bf16.mxu1 %v858_v42 }
 0x219   : > { %1139 = vmatmul.mubr.bf16.gmra.mrb[32].mxu0 %v858_v42 }
 0x21a   : > { %1148 = vmatprep.mubr.bf16.mxu0 %v3320_v54 }
 0x21d   : > { %2809 = vmatmul.mubr.bf16.gmra.mrb[32].mxu1 %v859_v63 }
 0x21e   : > { %2812 = vmatprep.mubr.bf16.mxu1 %v860_v53 }
 0x221   : > { %1149 = vmatmul.mubr.bf16.gmra.mrb[36].mxu0 %v859_v63 }
 0x222   : > { %1158 = vmatprep.mubr.bf16.mxu0 %v3320_v54 }
 0x225   : > { %2813 = vmatmul.mubr.bf16.gmra.mrb[36].mxu1 %v861_v9 }
 0x226   : > { %2816 = vmatprep.mubr.bf16.mxu1 %v3952_v45 }
 0x229   : > { %1159 = vmatmul.mubr.bf16.gmra.mrb[40].mxu0 %v860_v53 }
 0x22a   : > { %1168 = vmatprep.mubr.bf16.mxu0 %v3320_v54 }
 0x22d   : > { %2817 = vmatmul.mubr.bf16.gmra.mrb[40].mxu1 %v3973_v32 }
 0x22e   : > { %2820 = vmatprep.mubr.bf16.mxu1 %v3993_v51 }
 0x231   : > { %1169 = vmatmul.mubr.bf16.gmra.mrb[44].mxu0 %v861_v9 }
 0x235   : > { %2821 = vmatmul.mubr.bf16.gmra.mrb[44].mxu1 %v4012_v62 }
 0x2ac   : > { %v1060_v44 = vpop.f32.mrb[0].mxu0 }
 0x2ad   : > { %v1062_v55 = vpop.f32.mrb[1].mxu0  ;;  %v1380_v16 = vmul.f32 0.25503486, %v1060_v44 }
 0x2ae   : > { %v1064_v47 = vpop.f32.mrb[2].mxu0 }
 0x2af   : > { %v1381_v59 = vmul.f32 0.25503486, %v1064_v47  ;;  %v1066_v19 = vpop.f32.mrb[3].mxu0 }
 0x2b0   : > { %v2535_v5 = vpack.c.bf16 %v1066_v19, %v1062_v55  ;;  %v1180_v45 = vpop.f32.mrb[0].mxu1 }
 0x2b1   : > { %v2455_v26 = vpack.c.bf16 %v1381_v59, %v1380_v16  ;;  %v1182_v1 = vpop.f32.mrb[1].mxu1  ;;  %v1404_v32 = vmul.f32 0.25503486, %v1180_v45 }
 0x2b2   : > { %2536 = vst [vmem:[%s4076_s29] sm:$0xff] %v2535_v5   ;;  %v1184_v54 = vpop.f32.mrb[2].mxu1 }
 0x2b3   : > { %2456 = vst [vmem:[%s4080_s7] sm:$0xff] %v2455_v26   ;;  %v1405_v51 = vmul.f32 0.25503486, %v1184_v54  ;;  %v1186_v62 = vpop.f32.mrb[3].mxu1 }
 0x2b4   : > { %v2595_v61 = vpack.c.bf16 %v1186_v62, %v1182_v1  ;;  %v1070_v28 = vpop.f32.mrb[4].mxu0 }
 0x2b5   : > { %v2515_v2 = vpack.c.bf16 %v1405_v51, %v1404_v32  ;;  %v1072_v8 = vpop.f32.mrb[5].mxu0  ;;  %v1382_v27 = vmul.f32 0.25503486, %v1070_v28 }
 0x2b6   : > { %2733 = vst [vmem:[%s4076_s29 + $0x60] sm:$0xff] %v2595_v61   ;;  %v1074_v38 = vpop.f32.mrb[6].mxu0 }
 0x2b7   : > { %2718 = vst [vmem:[%s4080_s7 + $0x60] sm:$0xff] %v2515_v2   ;;  %v1383_v3 = vmul.f32 0.25503486, %v1074_v38  ;;  %v1076_v21 = vpop.f32.mrb[7].mxu0 }
 0x2b8   : > { %v2540_v60 = vpack.c.bf16 %v1076_v21, %v1072_v8  ;;  %v1190_v12 = vpop.f32.mrb[4].mxu1 }
 0x2b9   : > { %v2460_v10 = vpack.c.bf16 %v1383_v3, %v1382_v27  ;;  %v1192_v20 = vpop.f32.mrb[5].mxu1  ;;  %v1406_v48 = vmul.f32 0.25503486, %v1190_v12 }
 0x2ba   : > { %2722 = vst [vmem:[%s4076_s29 + $0x8] sm:$0xff] %v2540_v60   ;;  %v1194_v56 = vpop.f32.mrb[6].mxu1 }
 0x2bb   : > { %2707 = vst [vmem:[%s4080_s7 + $0x8] sm:$0xff] %v2460_v10   ;;  %v1407_v41 = vmul.f32 0.25503486, %v1194_v56  ;;  %v1196_v37 = vpop.f32.mrb[7].mxu1 }
 0x2bc   : > { %v2600_v22 = vpack.c.bf16 %v1196_v37, %v1192_v20  ;;  %v1080_v6 = vpop.f32.mrb[8].mxu0 }
 0x2bd   : > { %v2520_v49 = vpack.c.bf16 %v1407_v41, %v1406_v48  ;;  %v1082_v31 = vpop.f32.mrb[9].mxu0  ;;  %v1384_v15 = vmul.f32 0.25503486, %v1080_v6 }
 0x2be   : > { %2734 = vst [vmem:[%s4076_s29 + $0x68] sm:$0xff] %v2600_v22   ;;  %v1084_v50 = vpop.f32.mrb[10].mxu0 }
 0x2bf   : > { %2719 = vst [vmem:[%s4080_s7 + $0x68] sm:$0xff] %v2520_v49   ;;  %v1385_v0 = vmul.f32 0.25503486, %v1084_v50  ;;  %v1086_v58 = vpop.f32.mrb[11].mxu0 }
 0x2c0   : > { %v2545_v4 = vpack.c.bf16 %v1086_v58, %v1082_v31  ;;  %v1200_v30 = vpop.f32.mrb[8].mxu1 }
 0x2c1   : > { %v2465_v36 = vpack.c.bf16 %v1385_v0, %v1384_v15  ;;  %v1202_v13 = vpop.f32.mrb[9].mxu1  ;;  %v1408_v14 = vmul.f32 0.25503486, %v1200_v30 }
 0x2c2   : > { %2723 = vst [vmem:[%s4076_s29 + $0x10] sm:$0xff] %v2545_v4   ;;  %v1204_v40 = vpop.f32.mrb[10].mxu1 }
 0x2c3   : > { %2708 = vst [vmem:[%s4080_s7 + $0x10] sm:$0xff] %v2465_v36   ;;  %v1409_v24 = vmul.f32 0.25503486, %v1204_v40  ;;  %v1206_v35 = vpop.f32.mrb[11].mxu1 }
 0x2c4   : > { %v2605_v63 = vpack.c.bf16 %v1206_v35, %v1202_v13  ;;  %v1090_v52 = vpop.f32.mrb[12].mxu0 }
 0x2c5   : > { %v2525_v17 = vpack.c.bf16 %v1409_v24, %v1408_v14  ;;  %v1092_v11 = vpop.f32.mrb[13].mxu0  ;;  %v1386_v39 = vmul.f32 0.25503486, %v1090_v52 }
 0x2c6   : > { %2735 = vst [vmem:[%s4076_s29 + $0x70] sm:$0xff] %v2605_v63   ;;  %v1094_v46 = vpop.f32.mrb[14].mxu0 }
 0x2c7   : > { %2720 = vst [vmem:[%s4080_s7 + $0x70] sm:$0xff] %v2525_v17   ;;  %v1387_v23 = vmul.f32 0.25503486, %v1094_v46  ;;  %v1096_v33 = vpop.f32.mrb[15].mxu0 }
 0x2c8   : > { %v2550_v43 = vpack.c.bf16 %v1096_v33, %v1092_v11  ;;  %v1210_v25 = vpop.f32.mrb[12].mxu1 }
 0x2c9   : > { %v2470_v18 = vpack.c.bf16 %v1387_v23, %v1386_v39  ;;  %v1212_v53 = vpop.f32.mrb[13].mxu1  ;;  %v1410_v29 = vmul.f32 0.25503486, %v1210_v25 }
 0x2ca   : > { %2724 = vst [vmem:[%s4076_s29 + $0x18] sm:$0xff] %v2550_v43   ;;  %v1214_v57 = vpop.f32.mrb[14].mxu1 }
 0x2cb   : > { %2709 = vst [vmem:[%s4080_s7 + $0x18] sm:$0xff] %v2470_v18   ;;  %v1411_v7 = vmul.f32 0.25503486, %v1214_v57  ;;  %v1216_v34 = vpop.f32.mrb[15].mxu1 }
 0x2cc   : > { %v2610_v9 = vpack.c.bf16 %v1216_v34, %v1212_v53  ;;  %v1100_v42 = vpop.f32.mrb[16].mxu0 }
 0x2cd   : > { %v2530_v44 = vpack.c.bf16 %v1411_v7, %v1410_v29  ;;  %v1102_v55 = vpop.f32.mrb[17].mxu0  ;;  %v1388_v16 = vmul.f32 0.25503486, %v1100_v42 }
 0x2ce   : > { %2736 = vst [vmem:[%s4076_s29 + $0x78] sm:$0xff] %v2610_v9   ;;  %v1104_v47 = vpop.f32.mrb[18].mxu0 }
 0x2cf   : > { %2721 = vst [vmem:[%s4080_s7 + $0x78] sm:$0xff] %v2530_v44   ;;  %v1389_v59 = vmul.f32 0.25503486, %v1104_v47  ;;  %v1106_v19 = vpop.f32.mrb[19].mxu0 }
 0x2d0   : > { %v2555_v5 = vpack.c.bf16 %v1106_v19, %v1102_v55  ;;  %v2794_v45 = vpop.f32.mrb[16].mxu1 }
 0x2d1   : > { %v2475_v26 = vpack.c.bf16 %v1389_v59, %v1388_v16  ;;  %v1253_v1 = vpop.f32.mrb[17].mxu1 }
 0x2d2   : > { %2725 = vst [vmem:[%s4076_s29 + $0x20] sm:$0xff] %v2555_v5   ;;  %v2795_v54 = vpop.f32.mrb[18].mxu1 }
 0x2d3   : > { %2710 = vst [vmem:[%s4080_s7 + $0x20] sm:$0xff] %v2475_v26   ;;  %v2620_v32 = vpack.c.bf16 %v2795_v54, %v2794_v45  ;;  %v1256_v51 = vpop.f32.mrb[19].mxu1 }
 0x2d4   : > { %v2615_v62 = vpack.c.bf16 %v1256_v51, %v1253_v1  ;;  %v1110_v61 = vpop.f32.mrb[20].mxu0 }
 0x2d5   : > { %2737 = vst [vmem:[%s4100_s28 + $0x8] sm:$0xff] %v2620_v32   ;;  %v1112_v28 = vpop.f32.mrb[21].mxu0  ;;  %v1390_v8 = vmul.f32 0.25503486, %v1110_v61 }
 0x2d6   : > { %2616 = vst [vmem:[%s4100_s28] sm:$0xff] %v2615_v62   ;;  %v1114_v2 = vpop.f32.mrb[22].mxu0 }
 0x2d7   : > { %v1391_v38 = vmul.f32 0.25503486, %v1114_v2  ;;  %v1116_v27 = vpop.f32.mrb[23].mxu0 }
 0x2d8   : > { %v2560_v3 = vpack.c.bf16 %v1116_v27, %v1112_v28  ;;  %v2798_v21 = vpop.f32.mrb[20].mxu1 }
 0x2d9   : > { %v2480_v60 = vpack.c.bf16 %v1391_v38, %v1390_v8  ;;  %v1269_v12 = vpop.f32.mrb[21].mxu1 }
 0x2da   : > { %2726 = vst [vmem:[%s4076_s29 + $0x28] sm:$0xff] %v2560_v3   ;;  %v2799_v10 = vpop.f32.mrb[22].mxu1 }
 0x2db   : > { %2711 = vst [vmem:[%s4080_s7 + $0x28] sm:$0xff] %v2480_v60   ;;  %v2630_v20 = vpack.c.bf16 %v2799_v10, %v2798_v21  ;;  %v1272_v56 = vpop.f32.mrb[23].mxu1 }
 0x2dc   : > { %v2625_v48 = vpack.c.bf16 %v1272_v56, %v1269_v12  ;;  %v1120_v41 = vpop.f32.mrb[24].mxu0 }
 0x2dd   : > { %2739 = vst [vmem:[%s4100_s28 + $0x18] sm:$0xff] %v2630_v20   ;;  %v1122_v37 = vpop.f32.mrb[25].mxu0  ;;  %v1392_v6 = vmul.f32 0.25503486, %v1120_v41 }
 0x2de   : > { %2738 = vst [vmem:[%s4100_s28 + $0x10] sm:$0xff] %v2625_v48   ;;  %v1124_v22 = vpop.f32.mrb[26].mxu0 }
 0x2df   : > { %v1393_v49 = vmul.f32 0.25503486, %v1124_v22  ;;  %v1126_v31 = vpop.f32.mrb[27].mxu0 }
 0x2e0   : > { %v2565_v50 = vpack.c.bf16 %v1126_v31, %v1122_v37  ;;  %v2802_v15 = vpop.f32.mrb[24].mxu1 }
 0x2e1   : > { %v2485_v0 = vpack.c.bf16 %v1393_v49, %v1392_v6  ;;  %v1285_v58 = vpop.f32.mrb[25].mxu1 }
 0x2e2   : > { %2727 = vst [vmem:[%s4076_s29 + $0x30] sm:$0xff] %v2565_v50   ;;  %v2803_v4 = vpop.f32.mrb[26].mxu1 }
 0x2e3   : > { %2712 = vst [vmem:[%s4080_s7 + $0x30] sm:$0xff] %v2485_v0   ;;  %v2640_v30 = vpack.c.bf16 %v2803_v4, %v2802_v15  ;;  %v1288_v36 = vpop.f32.mrb[27].mxu1 }
 0x2e4   : > { %v2635_v13 = vpack.c.bf16 %v1288_v36, %v1285_v58  ;;  %v1130_v40 = vpop.f32.mrb[28].mxu0 }
 0x2e5   : > { %2741 = vst [vmem:[%s4100_s28 + $0x28] sm:$0xff] %v2640_v30   ;;  %v1132_v14 = vpop.f32.mrb[29].mxu0  ;;  %v1394_v35 = vmul.f32 0.25503486, %v1130_v40 }
 0x2e6   : > { %2740 = vst [vmem:[%s4100_s28 + $0x20] sm:$0xff] %v2635_v13   ;;  %v1134_v24 = vpop.f32.mrb[30].mxu0 }
 0x2e7   : > { %v1395_v63 = vmul.f32 0.25503486, %v1134_v24  ;;  %v1136_v52 = vpop.f32.mrb[31].mxu0 }
 0x2e8   : > { %v2570_v17 = vpack.c.bf16 %v1136_v52, %v1132_v14  ;;  %v2806_v11 = vpop.f32.mrb[28].mxu1 }
 0x2e9   : > { %v2490_v46 = vpack.c.bf16 %v1395_v63, %v1394_v35  ;;  %v1301_v39 = vpop.f32.mrb[29].mxu1 }
 0x2ea   : > { %2728 = vst [vmem:[%s4076_s29 + $0x38] sm:$0xff] %v2570_v17   ;;  %v2807_v23 = vpop.f32.mrb[30].mxu1 }
 0x2eb   : > { %2713 = vst [vmem:[%s4080_s7 + $0x38] sm:$0xff] %v2490_v46   ;;  %v2650_v33 = vpack.c.bf16 %v2807_v23, %v2806_v11  ;;  %v1304_v43 = vpop.f32.mrb[31].mxu1 }
 0x2ec   : > { %v2645_v25 = vpack.c.bf16 %v1304_v43, %v1301_v39  ;;  %v1140_v18 = vpop.f32.mrb[32].mxu0 }
 0x2ed   : > { %2743 = vst [vmem:[%s4100_s28 + $0x38] sm:$0xff] %v2650_v33   ;;  %v1142_v53 = vpop.f32.mrb[33].mxu0  ;;  %v1396_v29 = vmul.f32 0.25503486, %v1140_v18 }
 0x2ee   : > { %2742 = vst [vmem:[%s4100_s28 + $0x30] sm:$0xff] %v2645_v25   ;;  %v1144_v57 = vpop.f32.mrb[34].mxu0 }
 0x2ef   : > { %v1397_v7 = vmul.f32 0.25503486, %v1144_v57  ;;  %v1146_v34 = vpop.f32.mrb[35].mxu0 }
 0x2f0   : > { %v2575_v9 = vpack.c.bf16 %v1146_v34, %v1142_v53  ;;  %v2810_v42 = vpop.f32.mrb[32].mxu1 }
 0x2f1   : > { %v2495_v44 = vpack.c.bf16 %v1397_v7, %v1396_v29  ;;  %v1317_v55 = vpop.f32.mrb[33].mxu1 }
 0x2f2   : > { %2729 = vst [vmem:[%s4076_s29 + $0x40] sm:$0xff] %v2575_v9   ;;  %v2811_v47 = vpop.f32.mrb[34].mxu1 }
 0x2f3   : > { %2714 = vst [vmem:[%s4080_s7 + $0x40] sm:$0xff] %v2495_v44   ;;  %v2660_v16 = vpack.c.bf16 %v2811_v47, %v2810_v42  ;;  %v1320_v59 = vpop.f32.mrb[35].mxu1 }
 0x2f4   : > { %v2655_v19 = vpack.c.bf16 %v1320_v59, %v1317_v55  ;;  %v1150_v5 = vpop.f32.mrb[36].mxu0 }
 0x2f5   : > { %2745 = vst [vmem:[%s4100_s28 + $0x48] sm:$0xff] %v2660_v16   ;;  %v1152_v45 = vpop.f32.mrb[37].mxu0  ;;  %v1398_v1 = vmul.f32 0.25503486, %v1150_v5 }
 0x2f6   : > { %2744 = vst [vmem:[%s4100_s28 + $0x40] sm:$0xff] %v2655_v19   ;;  %v1154_v26 = vpop.f32.mrb[38].mxu0 }
 0x2f7   : > { %v1399_v54 = vmul.f32 0.25503486, %v1154_v26  ;;  %v1156_v32 = vpop.f32.mrb[39].mxu0 }
 0x2f8   : > { %v2580_v51 = vpack.c.bf16 %v1156_v32, %v1152_v45  ;;  %v2814_v62 = vpop.f32.mrb[36].mxu1 }
 0x2f9   : > { %v2500_v61 = vpack.c.bf16 %v1399_v54, %v1398_v1  ;;  %v1333_v28 = vpop.f32.mrb[37].mxu1 }
 0x2fa   : > { %2730 = vst [vmem:[%s4076_s29 + $0x48] sm:$0xff] %v2580_v51   ;;  %v2815_v2 = vpop.f32.mrb[38].mxu1 }
 0x2fb   : > { %2715 = vst [vmem:[%s4080_s7 + $0x48] sm:$0xff] %v2500_v61   ;;  %v2670_v8 = vpack.c.bf16 %v2815_v2, %v2814_v62  ;;  %v1336_v38 = vpop.f32.mrb[39].mxu1 }
 0x2fc   : > { %v2665_v27 = vpack.c.bf16 %v1336_v38, %v1333_v28  ;;  %v1160_v3 = vpop.f32.mrb[40].mxu0 }
 0x2fd   : > { %2747 = vst [vmem:[%s4100_s28 + $0x58] sm:$0xff] %v2670_v8   ;;  %v1162_v21 = vpop.f32.mrb[41].mxu0  ;;  %v1400_v12 = vmul.f32 0.25503486, %v1160_v3 }
 0x2fe   : > { %2746 = vst [vmem:[%s4100_s28 + $0x50] sm:$0xff] %v2665_v27   ;;  %v1164_v60 = vpop.f32.mrb[42].mxu0 }
 0x2ff   : > { %v1401_v10 = vmul.f32 0.25503486, %v1164_v60  ;;  %v1166_v20 = vpop.f32.mrb[43].mxu0 }
 0x300   : > { %v2585_v56 = vpack.c.bf16 %v1166_v20, %v1162_v21  ;;  %v2818_v48 = vpop.f32.mrb[40].mxu1 }
 0x301   : > { %v2505_v41 = vpack.c.bf16 %v1401_v10, %v1400_v12  ;;  %v1349_v37 = vpop.f32.mrb[41].mxu1 }
 0x302   : > { %2731 = vst [vmem:[%s4076_s29 + $0x50] sm:$0xff] %v2585_v56   ;;  %v2819_v22 = vpop.f32.mrb[42].mxu1 }
 0x303   : > { %2716 = vst [vmem:[%s4080_s7 + $0x50] sm:$0xff] %v2505_v41   ;;  %v2680_v6 = vpack.c.bf16 %v2819_v22, %v2818_v48  ;;  %v1352_v49 = vpop.f32.mrb[43].mxu1 }
 0x304   : > { %v2675_v31 = vpack.c.bf16 %v1352_v49, %v1349_v37  ;;  %v1170_v50 = vpop.f32.mrb[44].mxu0 }
 0x305   : > { %2749 = vst [vmem:[%s4100_s28 + $0x68] sm:$0xff] %v2680_v6   ;;  %v1172_v15 = vpop.f32.mrb[45].mxu0  ;;  %v1402_v58 = vmul.f32 0.25503486, %v1170_v50 }
 0x306   : > { %2748 = vst [vmem:[%s4100_s28 + $0x60] sm:$0xff] %v2675_v31   ;;  %v1174_v0 = vpop.f32.mrb[46].mxu0 }
 0x307   : > { %v1403_v4 = vmul.f32 0.25503486, %v1174_v0  ;;  %v1176_v30 = vpop.f32.mrb[47].mxu0 }
 0x308   : > { %v2590_v36 = vpack.c.bf16 %v1176_v30, %v1172_v15  ;;  %v4138_v13 = vpop.f32.mrb[44].mxu1 }
 0x309   : > { %v2510_v40 = vpack.c.bf16 %v1403_v4, %v1402_v58  ;;  %v4142_v14 = vpop.f32.mrb[45].mxu1 }
 0x30a   : > { %2732 = vst [vmem:[%s4076_s29 + $0x58] sm:$0xff] %v2590_v36   ;;  %v4152_v24 = vpop.f32.mrb[46].mxu1  ;;  %s3321_s29 = smov [#allocation11]  }
 0x30b   : > { %2717 = vst [vmem:[%s4080_s7 + $0x58] sm:$0xff] %v2510_v40   ;;  %v2690_v35 = vpack.c.bf16 %v4152_v24, %v4138_v13  ;;  %v1368_v63 = vpop.f32.mrb[47].mxu1  ;;  %s3164_s2 = sshll.u32 %s3321_s29, 4  ;;  %s3165_s2 = int_to_ptr.vmem [resolvable:$false] %s3164_s2 }
 0x30c   : > { %s3166_s18 = scalar_lea.vmem %s3165_s2, 4096  ;;  %p3167_p5 = scmp.lt.s32.totalorder %s4140_s17, %s3165_s2 }
 0x30d   : > { %p3168_p10 = scmp.lt.s32.totalorder %s3166_s18, %s3160_s1 }
 0x30f   : > { %p3169_p13 = por %p3168_p10, %p3167_p5 }
 0x311   : > { %p3170_p9 = pnand %p3169_p13, %p3163_p0 }
 0x313   : > { %3173 = shalt.err (!%p3170_p9)
}
 0x314   : > { %s3174_s27 = scalar_lea.hbm %s4135_s12, 2048  ;;  %s3178_s9 = scalar_lea.hbm %s4278_s5, 4096 }
 0x315   : > { %p3175_p3 = scmp.ne.s32.totalorder %s4135_s12, %s3174_s27  ;;  %p3179_p12 = scmp.lt.u32.totalorder %s4135_s12, %s4278_s5 }
 0x316   : > { %p3180_p2 = scmp.lt.u32.totalorder %s3178_s9, %s3174_s27  ;;  %p3182_p6 = scmp.lt.u32.totalorder %s3174_s27, %s4135_s12 }
 0x317   : > { %p3176_p7 = pnand %p3175_p3, %p3508_p1 }
 0x318   : > { %p3181_p4 = por %p3180_p2, %p3179_p12 }
 0x319   : > { %p3177_p11 = pneg %p3176_p7 }
 0x31a   : > { %p3183_p8 = por %p3182_p6, %p3181_p4 }
 0x31c   : > { %p3184_p0 = pnand %p3183_p8, %p3177_p11 }
 0x31e   : > { %3187 = shalt.err (!%p3184_p0)
}
 0x31f   : > { %s3322_s1 = smov 64   ;;  %s3323_s29 = smov 4   ;;  %v2685_v52 = vpack.c.bf16 %v1368_v63, %v4142_v14 }
 0x320   : > { %2855 = dma.vmem_to_hbm [thread:$0]  (%p3508_p1), %s4140_s17, 2048, %s4135_s12, %s4166_s13, %s3322_s1, %s3322_s1, %s3323_s29  }
 0x321   : > { %s1893_s18 = scalar_lea.sflag [#allocation4], %s3566_s20  ;;  %s3188_s27 = scalar_lea.vmem %s4149_s11, 2048 }
 0x322   : > { %p3189_p5 = scmp.ne.s32.totalorder %s4149_s11, %s3188_s27  ;;  %s3324_s7 = smov [#allocation10]  }
 0x323   : > { %s3192_s10 = sshll.u32 %s3324_s7, 4  ;;  %s3193_s10 = int_to_ptr.vmem [resolvable:$false] %s3192_s10 }
 0x324   : > { %p3190_p10 = pnand %p3189_p5, %p3508_p1  ;;  %s3194_s9 = scalar_lea.vmem %s3193_s10, 4096 }
 0x325   : > { %p3195_p9 = scmp.lt.s32.totalorder %s4149_s11, %s3193_s10  ;;  %p3196_p3 = scmp.lt.s32.totalorder %s3194_s9, %s3188_s27 }
 0x326   : > { %p3191_p13 = pneg %p3190_p10 }
 0x327   : > { %p3197_p7 = por %p3196_p3, %p3195_p9 }
 0x329   : > { %p3198_p11 = pnand %p3197_p7, %p3191_p13 }
 0x32b   : > { %3201 = shalt.err (!%p3198_p11)
}
 0x32c   : > { %s3202_s17 = scalar_lea.hbm %s4147_s16, 2048  ;;  %s3206_s2 = scalar_lea.hbm %s4277_s4, 4096 }
 0x32d   : > { %p3203_p12 = scmp.ne.s32.totalorder %s4147_s16, %s3202_s17  ;;  %p3207_p6 = scmp.lt.u32.totalorder %s4147_s16, %s4277_s4 }
 0x32e   : > { %p3208_p8 = scmp.lt.u32.totalorder %s3206_s2, %s3202_s17  ;;  %p3210_p5 = scmp.lt.u32.totalorder %s3202_s17, %s4147_s16 }
 0x32f   : > { %p3204_p2 = pnand %p3203_p12, %p3508_p1 }
 0x330   : > { %p3209_p0 = por %p3208_p8, %p3207_p6 }
 0x331   : > { %p3205_p4 = pneg %p3204_p2 }
 0x332   : > { %p3211_p10 = por %p3210_p5, %p3209_p0 }
 0x334   : > { %p3212_p13 = pnand %p3211_p10, %p3205_p4 }
 0x336   : > { %3215 = shalt.err (!%p3212_p13)
}
 0x337   : > { %2854 = dma.vmem_to_hbm [thread:$0]  (%p3508_p1), %s4149_s11, 2048, %s4147_s16, %s1893_s18, %s3322_s1, %s3322_s1, %s3323_s29  }
 0x338   : > { %2751 = vst [vmem:[%s4100_s28 + $0x78] sm:$0xff] %v2690_v35   ;;  %2750 = vst [vmem:[%s4100_s28 + $0x70] sm:$0xff] %v2685_v52   ;;  %s3216_s27 = scalar_lea.vmem %s4159_s14, 2048  ;;  %s3325_s9 = smov [#allocation13]  }
 0x339   : > { %p3217_p9 = scmp.ne.s32.totalorder %s4159_s14, %s3216_s27  ;;  %s3220_s17 = sshll.u32 %s3325_s9, 4  ;;  %s3221_s17 = int_to_ptr.vmem [resolvable:$false] %s3220_s17 }
 0x33a   : > { %s3222_s20 = scalar_lea.vmem %s3221_s17, 4096  ;;  %p3223_p11 = scmp.lt.s32.totalorder %s4159_s14, %s3221_s17 }
 0x33b   : > { %p3218_p3 = pnand %p3217_p9, %p3508_p1  ;;  %p3224_p12 = scmp.lt.s32.totalorder %s3222_s20, %s3216_s27 }
 0x33d   : > { %p3219_p7 = pneg %p3218_p3  ;;  %p3225_p2 = por %p3224_p12, %p3223_p11 }
 0x33f   : > { %p3226_p4 = pnand %p3225_p2, %p3219_p7 }
 0x341   : > { %3229 = shalt.err (!%p3226_p4)
}
 0x342   : > { %s3230_s28 = scalar_lea.hbm %s4157_s0, 2048  ;;  %s3234_s18 = scalar_lea.hbm %s4279_s6, 4096 }
 0x343   : > { %p3231_p6 = scmp.ne.s32.totalorder %s4157_s0, %s3230_s28  ;;  %p3235_p5 = scmp.lt.u32.totalorder %s4157_s0, %s4279_s6 }
 0x344   : > { %p3236_p10 = scmp.lt.u32.totalorder %s3234_s18, %s3230_s28  ;;  %p3238_p9 = scmp.lt.u32.totalorder %s3230_s28, %s4157_s0 }
 0x345   : > { %p3232_p8 = pnand %p3231_p6, %p3508_p1 }
 0x346   : > { %p3237_p13 = por %p3236_p10, %p3235_p5 }
 0x347   : > { %p3233_p0 = pneg %p3232_p8 }
 0x348   : > { %p3239_p3 = por %p3238_p9, %p3237_p13 }
 0x34a   : > { %p3240_p7 = pnand %p3239_p3, %p3233_p0 }
 0x34c   : > { %3243 = shalt.err (!%p3240_p7)
}
 0x34d   : > { %2856 = dma.vmem_to_hbm [thread:$0]  (%p3508_p1), %s4159_s14, 2048, %s4157_s0, %s4166_s13, %s3322_s1, %s3322_s1, %s3323_s29  }
 0x34e PF: > { %s1969_s2 = sand.u32 1, %s3290_s21   ;;  %p4305_p11 = scmp.ne.s32.totalorder %s4288_s30, 0 }
 0x34f   : > { %p4306_p12 = scmp.ge.s32.totalorder %s3310_s26, 2  ;;  %s1970_s7 = scalar_lea.sflag [#allocation4], %s1969_s2 }
 0x351   : > { %p2875_p2 = pnand %p4306_p12, %p4305_p11 }
 0x353   : > { %3281 = dma.done.wait (!%p2875_p2), %s1970_s7, 2048  }
 0x354   : > { %3283 = vsyncadd (!%p2875_p2), %s1970_s7, 4294965248  ;;  %s4307_s8 = sadd.s32 4294967294, %s3310_s26  }
 0x355   : > { %s1978_s10 = sand.u32 1, %s4307_s8  }
 0x356   : > { %s1979_s27 = scalar_lea.sflag [#allocation12], %s1978_s10 }
 0x357   : > { %3285 = dma.done.wait (!%p2875_p2), %s1979_s27, 4096  }
 0x358   : > { %3287 = vsyncadd (!%p2875_p2), %s1979_s27, 4294963200  ;;  %s28_s26 = sadd.s32 1, %s3310_s26   ;;  %s4308_s21 = smov %s3294_s22 }
 0x359   : > { %p25_p1 = scmp.ge.s32.totalorder %s28_s26, 4   ;;  %s4309_s22 = smov %s3298_s23 }
 0x35a   : > { %s4310_s23 = smov %s3520_s15  ;;  %s4311_s24 = smov %s3306_s25 }
 0x35b   : > { %s4312_s25 = smov %s4314_s19  ;;  %27 = sbr.rel (!%p25_p1) target bundleno = 14 (0xe), region = 125 }
 0x362   :  { %1993 = vsyncpa [#allocation3], 1 }
 0x363   :  { %1995 = vsyncpa [#allocation3 + $0x1], 1 }
 0x364   :  { %1996 = vsyncpa [#allocation6], 1 }
 0x365   :  { %1997 = vsyncpa [#allocation9], 1 }
 0x366   :  { %1998 = vsyncpa [#allocation4], 1 }
 0x367   :  { %2000 = vsyncpa [#allocation4 + $0x1], 1 }
 0x368   :  { %2001 = vsyncpa [#allocation12], 1 }
 0x369   :  { %2003 = vsyncpa [#allocation12 + $0x1], 1 }

</bundles_post_ra>
